<compile_context>
chip_gen: v7x
topology: tpu7x:2x2x1
jax: 0.10.0
libtpu: 0.0.40
codegen_flags: <defaults>
</compile_context>

<pallas_src>
import functools

import numpy as np
import jax
import jax.numpy as jnp
from jax.experimental import pallas as pl
from jax.experimental.pallas import tpu as pltpu

EPS = 1e-5
LANES = 128


def _bn_train_folded(h, gamma, beta):
    """Training-mode BatchNorm1d folded into one scale/shift.

    One fused pass over h: sum(h) and sum(h*h) -> mean, biased var, then
    h * scale + shift  with  scale = gamma/sqrt(var+eps),
    shift = beta - mean*scale.
    """
    inv_n = np.float32(1.0 / h.shape[0])
    s1 = jnp.sum(h, axis=0, keepdims=True)
    s2 = jnp.sum(h * h, axis=0, keepdims=True)
    mean = s1 * inv_n
    var = s2 * inv_n - mean * mean          # biased variance (torch train BN)
    inv = jax.lax.rsqrt(var + EPS)
    scale = inv * gamma
    shift = beta - mean * scale
    return h * scale + shift


def batchnorm_net_kernel(
    x_ref,                                   # (N, 1280) f32
    w1_ref, g1_ref, be1_ref,                 # fc1 weight (bf16) + bn1 affine
    w2_ref, g2_ref, be2_ref,                 # fc2 weight (bf16) + bn2 affine
    w3_ref, b3_ref,                          # fc3 weight (bf16) + bias (padded)
    r1_ref, r2_ref,                          # (N, H) uint32 dropout bits
    o_ref,                                   # (N, out_pad) f32
    *, drop_p, training,
):
    use_dropout = training and drop_p > 0.0
    if use_dropout:
        thresh = np.uint32(min(int(round(drop_p * (1 << 32))), (1 << 32) - 1))
        keep_scale = np.float32(1.0 / (1.0 - drop_p))

    x = x_ref[...]

    # --- layer 1: fc1 (no bias; BN cancels it) -> bn1 -> dropout -> relu ---
    h = jnp.dot(x.astype(jnp.bfloat16), w1_ref[...],
                preferred_element_type=jnp.float32)
    h = _bn_train_folded(h, g1_ref[...], be1_ref[...])
    if use_dropout:
        h = jnp.where(r1_ref[...] >= thresh, h * keep_scale, 0.0)
    h = jnp.maximum(h, 0.0)

    # --- layer 2: fc2 (no bias) -> bn2 -> dropout -> relu -------------------
    h = jnp.dot(h.astype(jnp.bfloat16), w2_ref[...],
                preferred_element_type=jnp.float32)
    h = _bn_train_folded(h, g2_ref[...], be2_ref[...])
    if use_dropout:
        h = jnp.where(r2_ref[...] >= thresh, h * keep_scale, 0.0)
    h = jnp.maximum(h, 0.0)

    # --- layer 3: fc3 (bias kept) -------------------------------------------
    out = jnp.dot(h.astype(jnp.bfloat16), w3_ref[...],
                  preferred_element_type=jnp.float32) + b3_ref[...]
    o_ref[...] = out.astype(o_ref.dtype)


def batchnorm_net_forward(params, x, dropout_rng, *, drop_p=0.1, training=True):
    """Whole BatchNormNet forward in one Pallas kernel invocation."""
    n, _ = x.shape
    hidden = params["w1"].shape[1]
    out_dim = params["b3"].shape[1]

    # Pad fc3 output features up to a multiple of 128 lanes -> unmasked stores.
    out_pad = ((out_dim + LANES - 1) // LANES) * LANES
    w3, b3 = params["w3"], params["b3"]
    if out_pad != out_dim:
        w3 = jnp.pad(w3, ((0, 0), (0, out_pad - out_dim)))
        b3 = jnp.pad(b3, ((0, 0), (0, out_pad - out_dim)))

    # Dropout random bits drawn host-side (works on TPU and in interpret mode).
    if training and drop_p > 0.0:
        k1, k2 = jax.random.split(dropout_rng)
        r1 = jax.random.bits(k1, (n, hidden), dtype=jnp.uint32)
        r2 = jax.random.bits(k2, (n, hidden), dtype=jnp.uint32)
    else:
        r1 = jnp.zeros((n, hidden), jnp.uint32)
        r2 = jnp.zeros((n, hidden), jnp.uint32)

    kern = functools.partial(
        batchnorm_net_kernel, drop_p=float(drop_p), training=bool(training)
    )
    vmem = pl.BlockSpec(memory_space=pltpu.MemorySpace.VMEM)

    out = pl.pallas_call(
        kern,
        out_shape=jax.ShapeDtypeStruct((n, out_pad), jnp.float32),
        in_specs=[vmem] * 11,
        out_specs=vmem,
    )(
        x,
        params["w1"], params["g1"], params["be1"],
        params["w2"], params["g2"], params["be2"],
        w3, b3,
        r1, r2,
    )
    return out[:, :out_dim]


def init_params(key, in_dim, hidden_dim, out_dim):
    """PyTorch-style init: W, b ~ U(-1/sqrt(fan_in), 1/sqrt(fan_in)).

    Weights stored transposed vs. torch, i.e. (in, out), and in bf16 (MXU
    operands).  fc1/fc2 biases are omitted: training-mode BN cancels them
    exactly.  BN affine params and fc3 bias stay f32."""
    ks = jax.random.split(key, 6)

    def w(kw, fin, fout):
        bound = 1.0 / np.sqrt(fin)
        return jax.random.uniform(kw, (fin, fout), jnp.float32, -bound, bound
                                  ).astype(jnp.bfloat16)

    def b(kb, fin, fout):
        bound = 1.0 / np.sqrt(fin)
        return jax.random.uniform(kb, (1, fout), jnp.float32, -bound, bound)

    return {
        "w1": w(ks[0], in_dim, hidden_dim),
        "g1": jnp.ones((1, hidden_dim), jnp.float32),
        "be1": jnp.zeros((1, hidden_dim), jnp.float32),
        "w2": w(ks[2], hidden_dim, hidden_dim),
        "g2": jnp.ones((1, hidden_dim), jnp.float32),
        "be2": jnp.zeros((1, hidden_dim), jnp.float32),
        "w3": w(ks[4], hidden_dim, out_dim),
        "b3": b(ks[5], hidden_dim, out_dim),
    }


if __name__ == "__main__":
    IN_DIM = 1280          # fixed by the module (fc1: 1280 -> hidden)
    HIDDEN = 128
    OUT = 32
    BATCH = 128            # larger batch per call: amortizes weight DMA/overhead
    DROP_P = 0.1

    key = jax.random.PRNGKey(0)
    kx, kp, kd = jax.random.split(key, 3)

    x = jax.random.normal(kx, (BATCH, IN_DIM), jnp.float32)
    params = init_params(kp, IN_DIM, HIDDEN, OUT)

    out = batchnorm_net_forward(params, x, kd, drop_p=DROP_P, training=True)
    out = jax.block_until_ready(out)

    assert out.shape == (BATCH, OUT) and out.dtype == jnp.float32
    assert bool(jnp.all(jnp.isfinite(out)))
    print("KERNEL_OK")
</pallas_src>

<mosaic_0001>
module attributes {stable_mosaic.version = 11 : i64} {
  func.func @batchnorm_net_kernel(%arg0: memref<128x1280xf32, #tpu.memory_space<vmem>>, %arg1: memref<1280x128xbf16, #tpu.memory_space<vmem>>, %arg2: memref<1x128xf32, #tpu.memory_space<vmem>>, %arg3: memref<1x128xf32, #tpu.memory_space<vmem>>, %arg4: memref<128x128xbf16, #tpu.memory_space<vmem>>, %arg5: memref<1x128xf32, #tpu.memory_space<vmem>>, %arg6: memref<1x128xf32, #tpu.memory_space<vmem>>, %arg7: memref<128x128xbf16, #tpu.memory_space<vmem>>, %arg8: memref<1x128xf32, #tpu.memory_space<vmem>>, %arg9: memref<128x128xi32, #tpu.memory_space<vmem>>, %arg10: memref<128x128xi32, #tpu.memory_space<vmem>>, %arg11: memref<128x128xf32, #tpu.memory_space<vmem>>) attributes {dimension_semantics = [], scalar_prefetch = 0 : i64, scratch_operands = 0 : i64, tpu.core_type = #tpu.core_type<tc>} {
    %c0 = arith.constant 0 : index
    %c0_0 = arith.constant 0 : index
    %0 = vector.load %arg0[%c0, %c0_0] : memref<128x1280xf32, #tpu.memory_space<vmem>>, vector<128x1280xf32>
    %1 = arith.truncf %0 : vector<128x1280xf32> to vector<128x1280xbf16>
    %c0_1 = arith.constant 0 : index
    %c0_2 = arith.constant 0 : index
    %2 = vector.load %arg1[%c0_1, %c0_2] : memref<1280x128xbf16, #tpu.memory_space<vmem>>, vector<1280x128xbf16>
    %cst = arith.constant dense<0.000000e+00> : vector<128x128xf32>
    %3 = tpu.matmul %1, %2, %cst {dimension_numbers = #tpu.dot_dimension_numbers<[1], [0], [0], [1], [0, 0, 1, 1], [], []>} : vector<128x1280xbf16>, vector<1280x128xbf16>, vector<128x128xf32> -> vector<128x128xf32>
    %c0_3 = arith.constant 0 : index
    %c0_4 = arith.constant 0 : index
    %4 = vector.load %arg2[%c0_3, %c0_4] : memref<1x128xf32, #tpu.memory_space<vmem>>, vector<1x128xf32>
    %c0_5 = arith.constant 0 : index
    %c0_6 = arith.constant 0 : index
    %5 = vector.load %arg3[%c0_5, %c0_6] : memref<1x128xf32, #tpu.memory_space<vmem>>, vector<1x128xf32>
    %cst_7 = arith.constant dense<0.000000e+00> : vector<128xf32>
    %6 = vector.multi_reduction <add>, %3, %cst_7 [0] : vector<128x128xf32> to vector<128xf32>
    %7 = vector.shape_cast %6 : vector<128xf32> to vector<1x128xf32>
    %8 = arith.mulf %3, %3 : vector<128x128xf32>
    %cst_8 = arith.constant dense<0.000000e+00> : vector<128xf32>
    %9 = vector.multi_reduction <add>, %8, %cst_8 [0] : vector<128x128xf32> to vector<128xf32>
    %10 = vector.shape_cast %9 : vector<128xf32> to vector<1x128xf32>
    %cst_9 = arith.constant 7.812500e-03 : f32
    %11 = vector.broadcast %cst_9 : f32 to vector<1x128xf32>
    %12 = arith.mulf %7, %11 : vector<1x128xf32>
    %cst_10 = arith.constant 7.812500e-03 : f32
    %13 = vector.broadcast %cst_10 : f32 to vector<1x128xf32>
    %14 = arith.mulf %10, %13 : vector<1x128xf32>
    %15 = arith.mulf %12, %12 : vector<1x128xf32>
    %16 = arith.subf %14, %15 : vector<1x128xf32>
    %cst_11 = arith.constant 9.99999974E-6 : f32
    %17 = vector.broadcast %cst_11 : f32 to vector<1x128xf32>
    %18 = arith.addf %16, %17 : vector<1x128xf32>
    %19 = math.rsqrt %18 : vector<1x128xf32>
    %20 = arith.mulf %19, %4 : vector<1x128xf32>
    %21 = arith.mulf %12, %20 : vector<1x128xf32>
    %22 = arith.subf %5, %21 : vector<1x128xf32>
    %23 = vector.broadcast %20 : vector<1x128xf32> to vector<128x128xf32>
    %24 = arith.mulf %3, %23 : vector<128x128xf32>
    %25 = vector.broadcast %22 : vector<1x128xf32> to vector<128x128xf32>
    %26 = arith.addf %24, %25 : vector<128x128xf32>
    %c0_12 = arith.constant 0 : index
    %c0_13 = arith.constant 0 : index
    %27 = vector.load %arg9[%c0_12, %c0_13] : memref<128x128xi32, #tpu.memory_space<vmem>>, vector<128x128xi32>
    %c429496730_i32 = arith.constant 429496730 : i32
    %28 = vector.broadcast %c429496730_i32 : i32 to vector<128x128xi32>
    %29 = arith.cmpi uge, %27, %28 : vector<128x128xi32>
    %cst_14 = arith.constant 1.11111116 : f32
    %30 = vector.broadcast %cst_14 : f32 to vector<128x128xf32>
    %31 = arith.mulf %26, %30 : vector<128x128xf32>
    %cst_15 = arith.constant 0.000000e+00 : f32
    %32 = vector.broadcast %cst_15 : f32 to vector<128x128xf32>
    %33 = arith.select %29, %31, %32 : vector<128x128xi1>, vector<128x128xf32>
    %cst_16 = arith.constant 0.000000e+00 : f32
    %34 = vector.broadcast %cst_16 : f32 to vector<128x128xf32>
    %35 = arith.maximumf %33, %34 : vector<128x128xf32>
    %36 = arith.truncf %35 : vector<128x128xf32> to vector<128x128xbf16>
    %c0_17 = arith.constant 0 : index
    %c0_18 = arith.constant 0 : index
    %37 = vector.load %arg4[%c0_17, %c0_18] : memref<128x128xbf16, #tpu.memory_space<vmem>>, vector<128x128xbf16>
    %cst_19 = arith.constant dense<0.000000e+00> : vector<128x128xf32>
    %38 = tpu.matmul %36, %37, %cst_19 {dimension_numbers = #tpu.dot_dimension_numbers<[1], [0], [0], [1], [0, 0, 1, 1], [], []>} : vector<128x128xbf16>, vector<128x128xbf16>, vector<128x128xf32> -> vector<128x128xf32>
    %c0_20 = arith.constant 0 : index
    %c0_21 = arith.constant 0 : index
    %39 = vector.load %arg5[%c0_20, %c0_21] : memref<1x128xf32, #tpu.memory_space<vmem>>, vector<1x128xf32>
    %c0_22 = arith.constant 0 : index
    %c0_23 = arith.constant 0 : index
    %40 = vector.load %arg6[%c0_22, %c0_23] : memref<1x128xf32, #tpu.memory_space<vmem>>, vector<1x128xf32>
    %cst_24 = arith.constant dense<0.000000e+00> : vector<128xf32>
    %41 = vector.multi_reduction <add>, %38, %cst_24 [0] : vector<128x128xf32> to vector<128xf32>
    %42 = vector.shape_cast %41 : vector<128xf32> to vector<1x128xf32>
    %43 = arith.mulf %38, %38 : vector<128x128xf32>
    %cst_25 = arith.constant dense<0.000000e+00> : vector<128xf32>
    %44 = vector.multi_reduction <add>, %43, %cst_25 [0] : vector<128x128xf32> to vector<128xf32>
    %45 = vector.shape_cast %44 : vector<128xf32> to vector<1x128xf32>
    %cst_26 = arith.constant 7.812500e-03 : f32
    %46 = vector.broadcast %cst_26 : f32 to vector<1x128xf32>
    %47 = arith.mulf %42, %46 : vector<1x128xf32>
    %cst_27 = arith.constant 7.812500e-03 : f32
    %48 = vector.broadcast %cst_27 : f32 to vector<1x128xf32>
    %49 = arith.mulf %45, %48 : vector<1x128xf32>
    %50 = arith.mulf %47, %47 : vector<1x128xf32>
    %51 = arith.subf %49, %50 : vector<1x128xf32>
    %cst_28 = arith.constant 9.99999974E-6 : f32
    %52 = vector.broadcast %cst_28 : f32 to vector<1x128xf32>
    %53 = arith.addf %51, %52 : vector<1x128xf32>
    %54 = math.rsqrt %53 : vector<1x128xf32>
    %55 = arith.mulf %54, %39 : vector<1x128xf32>
    %56 = arith.mulf %47, %55 : vector<1x128xf32>
    %57 = arith.subf %40, %56 : vector<1x128xf32>
    %58 = vector.broadcast %55 : vector<1x128xf32> to vector<128x128xf32>
    %59 = arith.mulf %38, %58 : vector<128x128xf32>
    %60 = vector.broadcast %57 : vector<1x128xf32> to vector<128x128xf32>
    %61 = arith.addf %59, %60 : vector<128x128xf32>
    %c0_29 = arith.constant 0 : index
    %c0_30 = arith.constant 0 : index
    %62 = vector.load %arg10[%c0_29, %c0_30] : memref<128x128xi32, #tpu.memory_space<vmem>>, vector<128x128xi32>
    %c429496730_i32_31 = arith.constant 429496730 : i32
    %63 = vector.broadcast %c429496730_i32_31 : i32 to vector<128x128xi32>
    %64 = arith.cmpi uge, %62, %63 : vector<128x128xi32>
    %cst_32 = arith.constant 1.11111116 : f32
    %65 = vector.broadcast %cst_32 : f32 to vector<128x128xf32>
    %66 = arith.mulf %61, %65 : vector<128x128xf32>
    %cst_33 = arith.constant 0.000000e+00 : f32
    %67 = vector.broadcast %cst_33 : f32 to vector<128x128xf32>
    %68 = arith.select %64, %66, %67 : vector<128x128xi1>, vector<128x128xf32>
    %cst_34 = arith.constant 0.000000e+00 : f32
    %69 = vector.broadcast %cst_34 : f32 to vector<128x128xf32>
    %70 = arith.maximumf %68, %69 : vector<128x128xf32>
    %71 = arith.truncf %70 : vector<128x128xf32> to vector<128x128xbf16>
    %c0_35 = arith.constant 0 : index
    %c0_36 = arith.constant 0 : index
    %72 = vector.load %arg7[%c0_35, %c0_36] : memref<128x128xbf16, #tpu.memory_space<vmem>>, vector<128x128xbf16>
    %cst_37 = arith.constant dense<0.000000e+00> : vector<128x128xf32>
    %73 = tpu.matmul %71, %72, %cst_37 {dimension_numbers = #tpu.dot_dimension_numbers<[1], [0], [0], [1], [0, 0, 1, 1], [], []>} : vector<128x128xbf16>, vector<128x128xbf16>, vector<128x128xf32> -> vector<128x128xf32>
    %c0_38 = arith.constant 0 : index
    %c0_39 = arith.constant 0 : index
    %74 = vector.load %arg8[%c0_38, %c0_39] : memref<1x128xf32, #tpu.memory_space<vmem>>, vector<1x128xf32>
    %75 = vector.broadcast %74 : vector<1x128xf32> to vector<128x128xf32>
    %76 = arith.addf %73, %75 : vector<128x128xf32>
    %c0_40 = arith.constant 0 : index
    %c0_41 = arith.constant 0 : index
    %77 = vector.load %arg11[%c0_40, %c0_41] : memref<128x128xf32, #tpu.memory_space<vmem>>, vector<128x128xf32>
    tpu.vector_store %arg11[%c0_40, %c0_41], %76 {strides = array<i32>} : memref<128x128xf32, #tpu.memory_space<vmem>>, vector<128x128xf32>,
    return
  }
}

</mosaic_0001>

<bundles_post_ra>
// kernel: tpu_custom_call.1
= control target key start
LH: loop header
LB: loop body
LE: loop exit
PB: predicated region body
PF: predicated region fallthrough
CT: control target
= control target key end

     0   :  { %16 = vsyncpa [#allocation3], 0  ;;  %s3722_s0 = inlined_call_operand.hbm [shape: f32[128,1280], index: 0, kind: input, shape index: {}]   ;;  %s3723_s1 = inlined_call_operand.hbm [shape: bf16[1280,128], index: 1, kind: input, shape index: {}]   ;;  %s3724_s2 = inlined_call_operand.vmem [shape: f32[1,128], index: 2, kind: input, shape index: {}]   ;;  %s3725_s3 = inlined_call_operand.vmem [shape: f32[1,128], index: 3, kind: input, shape index: {}]   ;;  %s3726_s4 = inlined_call_operand.hbm [shape: bf16[128,128], index: 4, kind: input, shape index: {}]   ;;  %s3727_s5 = inlined_call_operand.vmem [shape: f32[1,128], index: 5, kind: input, shape index: {}]   ;;  %s3728_s6 = inlined_call_operand.vmem [shape: f32[1,128], index: 6, kind: input, shape index: {}]   ;;  %s3729_s7 = inlined_call_operand.hbm [shape: bf16[128,128], index: 7, kind: input, shape index: {}]   ;;  %s3730_s8 = inlined_call_operand.vmem [shape: f32[1,128], index: 8, kind: input, shape index: {}]   ;;  %s3731_s9 = inlined_call_operand.hbm [shape: u32[128,128], index: 9, kind: input, shape index: {}]   ;;  %s3732_s10 = inlined_call_operand.hbm [shape: u32[128,128], index: 10, kind: input, shape index: {}]   ;;  %s3733_s11 = inlined_call_operand.hbm [shape: f32[128,128], index: 11, kind: output, shape index: {}]  }
   0x1   :  { %17 = vsyncpa [#allocation6], 0 }
   0x2   :  { %18 = vsyncpa [#allocation9], 0 }
   0x3   :  { %19 = vsyncpa [#allocation12], 0 }
   0x4   :  { %20 = vsyncpa [#allocation4], 0  ;;  %s3040_s17 = smov [#allocation5]   ;;  %s2876_s21 = scalar_lea.hbm %s3723_s1, 10240 }
   0x5   :  { %s38_s18 = sshll.u32 %s3040_s17, 4  ;;  %p2877_p0 = scmp.ne.s32.totalorder %s3723_s1, %s2876_s21  ;;  %s39_s18 = int_to_ptr.vmem [resolvable:$true] %s38_s18 }
   0x6   :  { %p2880_p1 = scmp.lt.u32.totalorder %s2876_s21, %s3723_s1 }
   0x8   :  { %p2882_p2 = pnand %p2880_p1, %p2877_p0 }
   0xa   :  { %2885 = shalt.err (!%p2882_p2)
}
   0xb   :  { %s2886_s26 = scalar_lea.vmem %s39_s18, 10240  ;;  %p2891_p4 = scmp.lt.s32.totalorder %s39_s18, %s39_s18 }
   0xc   :  { %p2887_p3 = scmp.ne.s32.totalorder %s39_s18, %s2886_s26  ;;  %p2892_p5 = scmp.lt.s32.totalorder %s2886_s26, %s2886_s26 }
   0xe   :  { %p2893_p6 = por %p2892_p5, %p2891_p4 }
  0x10   :  { %p2894_p7 = pnand %p2893_p6, %p2887_p3 }
  0x12   :  { %2897 = shalt.err (!%p2894_p7)
}
  0x13   :  { %s3041_s27 = smov 64   ;;  %s3042_s28 = smov 4  }
  0x14   :  { %44 = dma.hbm_to_vmem [thread:$0]  %s3723_s1, 10240, %s39_s18, [#allocation6], %s3041_s27, %s3041_s27, %s3042_s28  }
  0x15   :  { %s3043_s12 = smov [#allocation8]   ;;  %s3044_s14 = smov [#allocation2]  }
  0x16   :  { %s70_s13 = sshll.u32 %s3043_s12, 4  ;;  %s26_s15 = sshll.u32 %s3044_s14, 4  ;;  %s71_s13 = int_to_ptr.vmem [resolvable:$true] %s70_s13  ;;  %s27_s15 = int_to_ptr.vmem [resolvable:$true] %s26_s15 }
  0x17   :  { %s2898_s19 = scalar_lea.hbm %s3729_s7, 1024 }
  0x18   :  { %p2899_p8 = scmp.ne.s32.totalorder %s3729_s7, %s2898_s19  ;;  %p2902_p9 = scmp.lt.u32.totalorder %s2898_s19, %s3729_s7 }
  0x1a   :  { %p2904_p10 = pnand %p2902_p9, %p2899_p8 }
  0x1c   :  { %2907 = shalt.err (!%p2904_p10)
}
  0x1d   :  { %s2908_s1 = scalar_lea.vmem %s71_s13, 1024  ;;  %p2913_p12 = scmp.lt.s32.totalorder %s71_s13, %s71_s13 }
  0x1e   :  { %p2909_p11 = scmp.ne.s32.totalorder %s71_s13, %s2908_s1  ;;  %p2914_p13 = scmp.lt.s32.totalorder %s2908_s1, %s2908_s1 }
  0x20   :  { %p2915_p0 = por %p2914_p13, %p2913_p12 }
  0x22   :  { %p2916_p1 = pnand %p2915_p0, %p2909_p11 }
  0x24   :  { %2919 = shalt.err (!%p2916_p1)
}
  0x25   :  { %76 = dma.hbm_to_vmem [thread:$0]  %s3729_s7, 1024, %s71_s13, [#allocation9], %s3041_s27, %s3041_s27, %s3042_s28  }
  0x26   :  { %s2920_s29 = scalar_lea.hbm %s3722_s0, 20480 }
  0x27   :  { %p2921_p2 = scmp.ne.s32.totalorder %s3722_s0, %s2920_s29  ;;  %p2924_p3 = scmp.lt.u32.totalorder %s2920_s29, %s3722_s0 }
  0x29   :  { %p2926_p4 = pnand %p2924_p3, %p2921_p2 }
  0x2b   :  { %2929 = shalt.err (!%p2926_p4)
}
  0x2c   :  { %s2930_s17 = scalar_lea.vmem %s27_s15, 20480  ;;  %p2935_p6 = scmp.lt.s32.totalorder %s27_s15, %s27_s15 }
  0x2d   :  { %p2931_p5 = scmp.ne.s32.totalorder %s27_s15, %s2930_s17  ;;  %p2936_p7 = scmp.lt.s32.totalorder %s2930_s17, %s2930_s17 }
  0x2f   :  { %p2937_p8 = por %p2936_p7, %p2935_p6 }
  0x31   :  { %p2938_p9 = pnand %p2937_p8, %p2931_p5 }
  0x33   :  { %2941 = shalt.err (!%p2938_p9)
}
  0x34   :  { %s3045_s7 = smov 1280   ;;  %s3046_s13 = smov 80  }
  0x35   :  { %32 = dma.hbm_to_vmem [thread:$0]  %s3722_s0, 20480, %s27_s15, [#allocation3], %s3045_s7, %s3045_s7, %s3046_s13  }
  0x36   :  { %s3047_s21 = smov [#allocation7]   ;;  %s3048_s23 = smov [#allocation10]  }
  0x37   :  { %s54_s22 = sshll.u32 %s3047_s21, 4  ;;  %s84_s1 = sshll.u32 %s3048_s23, 4  ;;  %s55_s22 = int_to_ptr.vmem [resolvable:$true] %s54_s22  ;;  %s85_s1 = int_to_ptr.vmem [resolvable:$true] %s84_s1 }
  0x38   :  { %s2942_s25 = scalar_lea.hbm %s3726_s4, 1024 }
  0x39   :  { %p2943_p10 = scmp.ne.s32.totalorder %s3726_s4, %s2942_s25  ;;  %p2946_p11 = scmp.lt.u32.totalorder %s2942_s25, %s3726_s4 }
  0x3b   :  { %p2948_p12 = pnand %p2946_p11, %p2943_p10 }
  0x3d   :  { %2951 = shalt.err (!%p2948_p12)
}
  0x3e   :  { %s2952_s0 = scalar_lea.vmem %s55_s22, 1024  ;;  %p2957_p0 = scmp.lt.s32.totalorder %s55_s22, %s55_s22 }
  0x3f   :  { %p2953_p13 = scmp.ne.s32.totalorder %s55_s22, %s2952_s0  ;;  %p2958_p1 = scmp.lt.s32.totalorder %s2952_s0, %s2952_s0 }
  0x41   :  { %p2959_p2 = por %p2958_p1, %p2957_p0 }
  0x43   :  { %p2960_p3 = pnand %p2959_p2, %p2953_p13 }
  0x45   :  { %2963 = shalt.err (!%p2960_p3)
}
  0x46   :  { %60 = dma.hbm_to_vmem [thread:$0]  %s3726_s4, 1024, %s55_s22, [#allocation6], %s3041_s27, %s3041_s27, %s3042_s28  }
  0x47   :  { %s2964_s7 = scalar_lea.hbm %s3731_s9, 2048 }
  0x48   :  { %p2965_p4 = scmp.ne.s32.totalorder %s3731_s9, %s2964_s7  ;;  %p2968_p5 = scmp.lt.u32.totalorder %s2964_s7, %s3731_s9 }
  0x4a   :  { %p2970_p6 = pnand %p2968_p5, %p2965_p4 }
  0x4c   :  { %2973 = shalt.err (!%p2970_p6)
}
  0x4d   :  { %s2974_s23 = scalar_lea.vmem %s85_s1, 2048  ;;  %p2979_p8 = scmp.lt.s32.totalorder %s85_s1, %s85_s1 }
  0x4e   :  { %p2975_p7 = scmp.ne.s32.totalorder %s85_s1, %s2974_s23  ;;  %p2980_p9 = scmp.lt.s32.totalorder %s2974_s23, %s2974_s23 }
  0x50   :  { %p2981_p10 = por %p2980_p9, %p2979_p8 }
  0x52   :  { %p2982_p11 = pnand %p2981_p10, %p2975_p7 }
  0x54   :  { %2985 = shalt.err (!%p2982_p11)
}
  0x55   :  { %s3049_s4 = smov 128   ;;  %s3050_s27 = smov 8  }
  0x56   :  { %90 = dma.hbm_to_vmem [thread:$0]  %s3731_s9, 2048, %s85_s1, [#allocation9], %s3049_s4, %s3049_s4, %s3050_s27  }
  0x57   :  { %s3051_s18 = smov [#allocation11]   ;;  %s2986_s29 = scalar_lea.hbm %s3732_s10, 2048 }
  0x58   :  { %s96_s24 = sshll.u32 %s3051_s18, 4  ;;  %p2987_p12 = scmp.ne.s32.totalorder %s3732_s10, %s2986_s29  ;;  %s97_s24 = int_to_ptr.vmem [resolvable:$true] %s96_s24 }
  0x59   :  { %p2990_p13 = scmp.lt.u32.totalorder %s2986_s29, %s3732_s10 }
  0x5b   :  { %p2992_p0 = pnand %p2990_p13, %p2987_p12 }
  0x5d   :  { %2995 = shalt.err (!%p2992_p0)
}
  0x5e   :  { %s2996_s14 = scalar_lea.vmem %s97_s24, 2048  ;;  %p3001_p2 = scmp.lt.s32.totalorder %s97_s24, %s97_s24 }
  0x5f   :  { %p2997_p1 = scmp.ne.s32.totalorder %s97_s24, %s2996_s14  ;;  %p3002_p3 = scmp.lt.s32.totalorder %s2996_s14, %s2996_s14 }
  0x61   :  { %p3003_p4 = por %p3002_p3, %p3001_p2 }
  0x63   :  { %p3004_p5 = pnand %p3003_p4, %p2997_p1 }
  0x65   :  { %3007 = shalt.err (!%p3004_p5)
}
  0x66   :  { %102 = dma.hbm_to_vmem [thread:$0]  %s3732_s10, 2048, %s97_s24, [#allocation12], %s3049_s4, %s3049_s4, %s3050_s27  }
  0x67   :  { %3030 = dma.done.wait [#allocation3], 20480  }
  0x68   :  { %3031 = vsyncadd [#allocation3], 4294946816 }
  0x69   :  { %3032 = dma.done.wait [#allocation6], 11264  }
  0x6a   :  { %3033 = vsyncadd [#allocation6], 4294956032 }
  0x6b   :  { %3034 = dma.done.wait [#allocation9], 3072  }
  0x6c   :  { %3035 = vsyncadd [#allocation9], 4294964224 }
  0x6d   :  { %3036 = dma.done.wait [#allocation12], 2048  }
  0x6e   :  { %3037 = vsyncadd [#allocation12], 4294965248  ;;  %v2776_v0 = vld [vmem:[#allocation5 + $0x40] sm:$0xff]   ;;  %v2780_v4 = vld [vmem:[#allocation5 + $0x48] sm:$0xff]  }
  0x6f   :  { %v2777_v1 = vld [vmem:[#allocation5 + $0xc0] sm:$0xff]   ;;  %2347 = vmatprep.subr.bf16.mxu0 %v2776_v0  ;;  %v2781_v5 = vld [vmem:[#allocation5 + $0xc8] sm:$0xff]   ;;  %v2784_v8 = vld [vmem:[#allocation5 + $0x50] sm:$0xff]  }
  0x70   :  { %v2778_v2 = vld [vmem:[#allocation5] sm:$0xff]   ;;  %2411 = vmatprep.subr.bf16.mxu1 %v2777_v1  ;;  %v2782_v6 = vld [vmem:[#allocation5 + $0x8] sm:$0xff]   ;;  %v2785_v9 = vld [vmem:[#allocation5 + $0xd0] sm:$0xff]  }
  0x71   :  { %v2779_v3 = vld [vmem:[#allocation5 + $0x80] sm:$0xff]   ;;  %2348 = vmatpush3.bf16.msra.mxu0 %v2778_v2  ;;  %v2783_v7 = vld [vmem:[#allocation5 + $0x88] sm:$0xff]   ;;  %v2786_v10 = vld [vmem:[#allocation5 + $0x10] sm:$0xff]  }
  0x72   :  { %2412 = vmatpush3.bf16.msra.mxu1 %v2779_v3  ;;  %2349 = vmatprep.subr.bf16.mxu0 %v2780_v4  ;;  %v2787_v11 = vld [vmem:[#allocation5 + $0x90] sm:$0xff]   ;;  %v2788_v12 = vld [vmem:[#allocation5 + $0x58] sm:$0xff]   ;;  %v2792_v16 = vld [vmem:[#allocation5 + $0x60] sm:$0xff]  }
  0x73   :  { %2413 = vmatprep.subr.bf16.mxu1 %v2781_v5  ;;  %v2789_v13 = vld [vmem:[#allocation5 + $0xd8] sm:$0xff]   ;;  %v2793_v17 = vld [vmem:[#allocation5 + $0xe0] sm:$0xff]   ;;  %v2796_v20 = vld [vmem:[#allocation5 + $0x68] sm:$0xff]  }
  0x74   :  { %v2790_v14 = vld [vmem:[#allocation5 + $0x18] sm:$0xff]   ;;  %v2794_v18 = vld [vmem:[#allocation5 + $0x20] sm:$0xff]   ;;  %v2797_v21 = vld [vmem:[#allocation5 + $0xe8] sm:$0xff]  }
  0x75   :  { %2350 = vmatpush3.bf16.msra.mxu0 %v2782_v6  ;;  %v2791_v15 = vld [vmem:[#allocation5 + $0x98] sm:$0xff]   ;;  %v2795_v19 = vld [vmem:[#allocation5 + $0xa0] sm:$0xff]   ;;  %v2798_v22 = vld [vmem:[#allocation5 + $0x28] sm:$0xff]  }
  0x76   :  { %2414 = vmatpush3.bf16.msra.mxu1 %v2783_v7  ;;  %2351 = vmatprep.subr.bf16.mxu0 %v2784_v8  ;;  %v2799_v23 = vld [vmem:[#allocation5 + $0xa8] sm:$0xff]   ;;  %v2800_v24 = vld [vmem:[#allocation5 + $0x70] sm:$0xff]   ;;  %v2804_v28 = vld [vmem:[#allocation5 + $0x78] sm:$0xff]  }
  0x77   :  { %2415 = vmatprep.subr.bf16.mxu1 %v2785_v9  ;;  %v2801_v25 = vld [vmem:[#allocation5 + $0xf0] sm:$0xff]   ;;  %v2805_v29 = vld [vmem:[#allocation5 + $0xf8] sm:$0xff]   ;;  %v123_v32 = vld [vmem:[#allocation2 + $0x8] sm:$0xff] }
  0x78   :  { %v2802_v26 = vld [vmem:[#allocation5 + $0x30] sm:$0xff]   ;;  %v2806_v30 = vld [vmem:[#allocation5 + $0x38] sm:$0xff]   ;;  %v135_v36 = vld [vmem:[#allocation2 + $0x68] sm:$0xff] }
  0x79   :  { %2352 = vmatpush3.bf16.msra.mxu0 %v2786_v10  ;;  %v2803_v27 = vld [vmem:[#allocation5 + $0xb0] sm:$0xff]   ;;  %v2807_v31 = vld [vmem:[#allocation5 + $0xb8] sm:$0xff]   ;;  %v122_v37 = vld [vmem:[#allocation2] sm:$0xff] }
  0x7a   :  { %2416 = vmatpush3.bf16.msra.mxu1 %v2787_v11  ;;  %2353 = vmatprep.subr.bf16.mxu0 %v2788_v12  ;;  %v133_v33 = vld [vmem:[#allocation2 + $0x58] sm:$0xff]  ;;  %v132_v38 = vld [vmem:[#allocation2 + $0x50] sm:$0xff]  ;;  %v134_v42 = vld [vmem:[#allocation2 + $0x60] sm:$0xff] }
  0x7b   :  { %2417 = vmatprep.subr.bf16.mxu1 %v2789_v13  ;;  %v125_v34 = vld [vmem:[#allocation2 + $0x18] sm:$0xff]  ;;  %v283_v35 = vpack.c.bf16 %v133_v33, %v123_v32  ;;  %v282_v40 = vpack.c.bf16 %v132_v38, %v122_v37  ;;  %v124_v41 = vld [vmem:[#allocation2 + $0x10] sm:$0xff]  ;;  %v2808_v44 = vld [vmem:[#allocation5 + $0x140] sm:$0xff]  }
  0x7c   :  { %v285_v39 = vpack.c.bf16 %v135_v36, %v125_v34  ;;  %v284_v43 = vpack.c.bf16 %v134_v42, %v124_v41  ;;  %v2809_v45 = vld [vmem:[#allocation5 + $0x100] sm:$0xff]   ;;  %v143_v46 = vld [vmem:[#allocation2 + $0xa8] sm:$0xff]  ;;  %v153_v47 = vld [vmem:[#allocation2 + $0xf8] sm:$0xff] }
  0x7d   :  { %2354 = vmatpush3.bf16.msra.mxu0 %v2790_v14  ;;  %1034 = vmatprep.mubr.bf16.mxu0 %v283_v35  ;;  %v145_v48 = vld [vmem:[#allocation2 + $0xb8] sm:$0xff]  ;;  %v155_v49 = vld [vmem:[#allocation2 + $0x108] sm:$0xff]  ;;  %v293_v50 = vpack.c.bf16 %v153_v47, %v143_v46  ;;  %v142_v52 = vld [vmem:[#allocation2 + $0xa0] sm:$0xff] }
  0x7e   :  { %2418 = vmatpush3.bf16.msra.mxu1 %v2791_v15  ;;  %2355 = vmatprep.subr.bf16.mxu0 %v2792_v16  ;;  %v295_v51 = vpack.c.bf16 %v155_v49, %v145_v48  ;;  %v152_v53 = vld [vmem:[#allocation2 + $0xf0] sm:$0xff]  ;;  %v154_v55 = vld [vmem:[#allocation2 + $0x100] sm:$0xff]  ;;  %v2810_v57 = vld [vmem:[#allocation5 + $0x148] sm:$0xff]  }
  0x7f   :  { %2419 = vmatprep.subr.bf16.mxu1 %v2793_v17  ;;  %1131 = vmatprep.mubr.bf16.mxu1 %v285_v39  ;;  %v144_v54 = vld [vmem:[#allocation2 + $0xb0] sm:$0xff]  ;;  %v292_v56 = vpack.c.bf16 %v152_v53, %v142_v52  ;;  %v2811_v59 = vld [vmem:[#allocation5 + $0x108] sm:$0xff]   ;;  %v173_v61 = vld [vmem:[#allocation2 + $0x198] sm:$0xff] }
  0x80   :  { %v294_v58 = vpack.c.bf16 %v154_v55, %v144_v54  ;;  %v163_v60 = vld [vmem:[#allocation2 + $0x148] sm:$0xff]  ;;  %v165_v63 = vld [vmem:[#allocation2 + $0x158] sm:$0xff]  ;;  %v162_v2 = vld [vmem:[#allocation2 + $0x140] sm:$0xff] }
  0x81   :  { %2356 = vmatpush3.bf16.msra.mxu0 %v2794_v18  ;;  %v303_v62 = vpack.c.bf16 %v173_v61, %v163_v60  ;;  %v175_v0 = vld [vmem:[#allocation2 + $0x1a8] sm:$0xff]  ;;  %v172_v3 = vld [vmem:[#allocation2 + $0x190] sm:$0xff]  ;;  %v174_v7 = vld [vmem:[#allocation2 + $0x1a0] sm:$0xff] }
  0x82   :  { %2420 = vmatpush3.bf16.msra.mxu1 %v2795_v19  ;;  %2357 = vmatprep.subr.bf16.mxu0 %v2796_v20  ;;  %v305_v1 = vpack.c.bf16 %v175_v0, %v165_v63  ;;  %v164_v4 = vld [vmem:[#allocation2 + $0x150] sm:$0xff]  ;;  %v183_v8 = vld [vmem:[#allocation2 + $0x1e8] sm:$0xff]  ;;  %v193_v9 = vld [vmem:[#allocation2 + $0x238] sm:$0xff]  ;;  %v302_v12 = vpack.c.bf16 %v172_v3, %v162_v2 }
  0x83   :  { %2421 = vmatprep.subr.bf16.mxu1 %v2797_v21  ;;  %v2812_v5 = vld [vmem:[#allocation5 + $0x150] sm:$0xff]   ;;  %v185_v10 = vld [vmem:[#allocation2 + $0x1f8] sm:$0xff]  ;;  %v195_v11 = vld [vmem:[#allocation2 + $0x248] sm:$0xff]  ;;  %v304_v13 = vpack.c.bf16 %v174_v7, %v164_v4  ;;  %v313_v14 = vpack.c.bf16 %v193_v9, %v183_v8 }
  0x84   :  { %v2813_v6 = vld [vmem:[#allocation5 + $0x110] sm:$0xff]   ;;  %v2814_v15 = vld [vmem:[#allocation5 + $0x158] sm:$0xff]   ;;  %v315_v16 = vpack.c.bf16 %v195_v11, %v185_v10  ;;  %v182_v18 = vld [vmem:[#allocation2 + $0x1e0] sm:$0xff] }
  0x85   :  { %2358 = vmatpush3.bf16.msra.mxu0 %v2798_v22  ;;  %v2815_v17 = vld [vmem:[#allocation5 + $0x118] sm:$0xff]   ;;  %v192_v19 = vld [vmem:[#allocation2 + $0x230] sm:$0xff]  ;;  %v194_v21 = vld [vmem:[#allocation2 + $0x240] sm:$0xff] }
  0x86   :  { %2422 = vmatpush3.bf16.msra.mxu1 %v2799_v23  ;;  %2359 = vmatprep.subr.bf16.mxu0 %v2800_v24  ;;  %v184_v20 = vld [vmem:[#allocation2 + $0x1f0] sm:$0xff]  ;;  %v203_v22 = vld [vmem:[#allocation2 + $0x288] sm:$0xff]  ;;  %v213_v23 = vld [vmem:[#allocation2 + $0x2d8] sm:$0xff] }
  0x87   :  { %2423 = vmatprep.subr.bf16.mxu1 %v2801_v25  ;;  %v205_v24 = vld [vmem:[#allocation2 + $0x298] sm:$0xff]  ;;  %v215_v25 = vld [vmem:[#allocation2 + $0x2e8] sm:$0xff]  ;;  %v2819_v32 = vld [vmem:[#allocation5 + $0x180] sm:$0xff]  }
  0x88   :  { %v325_v33 = vpack.c.bf16 %v215_v25, %v205_v24  ;;  %v2820_v34 = vld [vmem:[#allocation5 + $0x1c8] sm:$0xff]   ;;  %v202_v35 = vld [vmem:[#allocation2 + $0x280] sm:$0xff]  ;;  %v212_v36 = vld [vmem:[#allocation2 + $0x2d0] sm:$0xff] }
  0x89   :  { %2360 = vmatpush3.bf16.msra.mxu0 %v2802_v26  ;;  %v2816_v26 = vld [vmem:[#allocation5 + $0x160] sm:$0xff]   ;;  %v204_v37 = vld [vmem:[#allocation2 + $0x290] sm:$0xff]  ;;  %v223_v39 = vld [vmem:[#allocation2 + $0x328] sm:$0xff]  ;;  %v322_v46 = vpack.c.bf16 %v212_v36, %v202_v35 }
  0x8a   :  { %2424 = vmatpush3.bf16.msra.mxu1 %v2803_v27  ;;  %2361 = vmatprep.subr.bf16.mxu0 %v2804_v28  ;;  %v2817_v27 = vld [vmem:[#allocation5 + $0x120] sm:$0xff]   ;;  %v312_v28 = vpack.c.bf16 %v192_v19, %v182_v18  ;;  %v233_v41 = vld [vmem:[#allocation2 + $0x378] sm:$0xff]  ;;  %v2824_v47 = vld [vmem:[#allocation5 + $0x1d0] sm:$0xff]  }
  0x8b   :  { %2425 = vmatprep.subr.bf16.mxu1 %v2805_v29  ;;  %v2818_v29 = vld [vmem:[#allocation5 + $0x1c0] sm:$0xff]   ;;  %v225_v42 = vld [vmem:[#allocation2 + $0x338] sm:$0xff]  ;;  %v333_v49 = vpack.c.bf16 %v233_v41, %v223_v39  ;;  %v232_v54 = vld [vmem:[#allocation2 + $0x370] sm:$0xff] }
  0x8c   :  { %v214_v38 = vld [vmem:[#allocation2 + $0x2e0] sm:$0xff]  ;;  %v2826_v52 = vld [vmem:[#allocation5 + $0x1d8] sm:$0xff]   ;;  %v224_v55 = vld [vmem:[#allocation2 + $0x330] sm:$0xff] }
  0x8d   :  { %2362 = vmatpush3.bf16.msra.mxu0 %v2806_v30  ;;  %v314_v30 = vpack.c.bf16 %v194_v21, %v184_v20  ;;  %v324_v48 = vpack.c.bf16 %v214_v38, %v204_v37  ;;  %v222_v53 = vld [vmem:[#allocation2 + $0x320] sm:$0xff]  ;;  %v245_v60 = vld [vmem:[#allocation2 + $0x3d8] sm:$0xff]  ;;  %v255_v61 = vld [vmem:[#allocation2 + $0x428] sm:$0xff] }
  0x8e   :  { %2426 = vmatpush3.bf16.msra.mxu1 %v2807_v31  ;;  %2475 = vmatprep.subr.bf16.mxu0 %v2808_v44  ;;  %v323_v31 = vpack.c.bf16 %v213_v23, %v203_v22  ;;  %v2822_v44 = vld [vmem:[#allocation5 + $0x168] sm:$0xff]   ;;  %v332_v63 = vpack.c.bf16 %v232_v54, %v222_v53  ;;  %v2829_v0 = vld [vmem:[#allocation5 + $0x130] sm:$0xff]   ;;  %v2830_v3 = vld [vmem:[#allocation5 + $0x1e0] sm:$0xff]   ;;  %v345_v4 = vpack.c.bf16 %v255_v61, %v245_v60 }
  0x8f   :  { %2539 = vmatprep.subr.bf16.mxu1 %v2818_v29  ;;  %v2832_v7 = vld [vmem:[#allocation5 + $0x1e8] sm:$0xff]   ;;  %v252_v8 = vld [vmem:[#allocation2 + $0x410] sm:$0xff]  ;;  %v254_v10 = vld [vmem:[#allocation2 + $0x420] sm:$0xff] }
  0x90   :  { %1035 = vmatmul.mubr.bf16.vlgmr.msra.gmra.mrb[0].mxu0 %v282_v40  ;;  %v2821_v40 = vld [vmem:[#allocation5 + $0x188] sm:$0xff]   ;;  %v244_v9 = vld [vmem:[#allocation2 + $0x3d0] sm:$0xff]  ;;  %v2835_v20 = vld [vmem:[#allocation5 + $0x138] sm:$0xff]  }
  0x91   :  { %1132 = vmatmul.mubr.bf16.vlgmr.msra.gmra.mrb[0].mxu1 %v284_v43  ;;  %2476 = vmatpush3.bf16.msra.mxu0 %v2809_v45  ;;  %v235_v43 = vld [vmem:[#allocation2 + $0x388] sm:$0xff]  ;;  %v344_v18 = vpack.c.bf16 %v254_v10, %v244_v9  ;;  %v2836_v22 = vld [vmem:[#allocation5 + $0x1f0] sm:$0xff]   ;;  %v262_v23 = vld [vmem:[#allocation2 + $0x460] sm:$0xff] }
  0x92   :  { %1042 = vmatprep.mubr.bf16.mxu0 %v293_v50  ;;  %1139 = vmatprep.mubr.bf16.mxu1 %v295_v51  ;;  %v2823_v45 = vld [vmem:[#allocation5 + $0x128] sm:$0xff]   ;;  %v2825_v50 = vld [vmem:[#allocation5 + $0x190] sm:$0xff]   ;;  %v335_v51 = vpack.c.bf16 %v235_v43, %v225_v42  ;;  %v126_v39 = vld [vmem:[#allocation2 + $0x20] sm:$0xff] }
  0x93   :  { %2477 = vmatprep.subr.bf16.mxu0 %v2810_v57  ;;  %2540 = vmatpush3.bf16.msra.mxu1 %v2819_v32  ;;  %v243_v57 = vld [vmem:[#allocation2 + $0x3c8] sm:$0xff]  ;;  %v272_v24 = vld [vmem:[#allocation2 + $0x4b0] sm:$0xff]  ;;  %v2840_v32 = vld [vmem:[#allocation5 + $0x240] sm:$0xff]  }
  0x94   :  { %2541 = vmatprep.subr.bf16.mxu1 %v2820_v34  ;;  %v2833_v11 = vld [vmem:[#allocation5 + $0x1a8] sm:$0xff]   ;;  %v2837_v25 = vld [vmem:[#allocation5 + $0x1b0] sm:$0xff]   ;;  %v352_v34 = vpack.c.bf16 %v272_v24, %v262_v23  ;;  %v138_v42 = vld [vmem:[#allocation2 + $0x80] sm:$0xff] }
  0x95   :  { %2478 = vmatpush3.bf16.msra.mxu0 %v2811_v59  ;;  %v2827_v59 = vld [vmem:[#allocation5 + $0x198] sm:$0xff]   ;;  %v127_v29 = vld [vmem:[#allocation2 + $0x28] sm:$0xff]  ;;  %v128_v41 = vld [vmem:[#allocation2 + $0x30] sm:$0xff] }
  0x96   :  { %2479 = vmatprep.subr.bf16.mxu0 %v2812_v5  ;;  %v2831_v5 = vld [vmem:[#allocation5 + $0x1a0] sm:$0xff]   ;;  %v139_v35 = vld [vmem:[#allocation2 + $0x88] sm:$0xff]  ;;  %v156_v53 = vld [vmem:[#allocation2 + $0x110] sm:$0xff] }
  0x97   :  { %2542 = vmatpush3.bf16.msra.mxu1 %v2821_v40  ;;  %v136_v40 = vld [vmem:[#allocation2 + $0x70] sm:$0xff]  ;;  %v147_v43 = vld [vmem:[#allocation2 + $0xc8] sm:$0xff]  ;;  %v169_v61 = vld [vmem:[#allocation2 + $0x178] sm:$0xff] }
  0x98   :  { %1043 = vmatmul.mubr.bf16.gmra.mrb[4].mxu0 %v292_v56  ;;  %2543 = vmatprep.subr.bf16.mxu1 %v2824_v47  ;;  %v234_v56 = vld [vmem:[#allocation2 + $0x380] sm:$0xff]  ;;  %v159_v47 = vld [vmem:[#allocation2 + $0x128] sm:$0xff]  ;;  %v2844_v60 = vld [vmem:[#allocation5 + $0x250] sm:$0xff]  }
  0x99   :  { %1140 = vmatmul.mubr.bf16.gmra.mrb[4].mxu1 %v294_v58  ;;  %1050 = vmatprep.mubr.bf16.mxu0 %v303_v62  ;;  %v253_v58 = vld [vmem:[#allocation2 + $0x418] sm:$0xff]  ;;  %v2828_v62 = vld [vmem:[#allocation5 + $0x170] sm:$0xff]   ;;  %v187_v9 = vld [vmem:[#allocation2 + $0x208] sm:$0xff] }
  0x9a   :  { %1147 = vmatprep.mubr.bf16.mxu1 %v305_v1  ;;  %2480 = vmatpush3.bf16.msra.mxu0 %v2813_v6  ;;  %v334_v1 = vpack.c.bf16 %v234_v56, %v224_v55  ;;  %v343_v2 = vpack.c.bf16 %v253_v58, %v243_v57  ;;  %v242_v6 = vld [vmem:[#allocation2 + $0x3c0] sm:$0xff]  ;;  %v2843_v55 = vld [vmem:[#allocation5 + $0x208] sm:$0xff]   ;;  %v148_v56 = vld [vmem:[#allocation2 + $0xd0] sm:$0xff] }
  0x9b   :  { %2481 = vmatprep.subr.bf16.mxu0 %v2814_v15  ;;  %2544 = vmatpush3.bf16.msra.mxu1 %v2825_v50  ;;  %v275_v15 = vld [vmem:[#allocation2 + $0x4c8] sm:$0xff]  ;;  %v158_v57 = vld [vmem:[#allocation2 + $0x120] sm:$0xff]  ;;  %v197_v10 = vld [vmem:[#allocation2 + $0x258] sm:$0xff] }
  0x9c   :  { %2545 = vmatprep.subr.bf16.mxu1 %v2826_v52  ;;  %v146_v52 = vld [vmem:[#allocation2 + $0xc0] sm:$0xff]  ;;  %v167_v58 = vld [vmem:[#allocation2 + $0x168] sm:$0xff]  ;;  %v188_v23 = vld [vmem:[#allocation2 + $0x210] sm:$0xff] }
  0x9d   :  { %v198_v24 = vld [vmem:[#allocation2 + $0x260] sm:$0xff] }
  0x9e   :  { %2482 = vmatpush3.bf16.msra.mxu0 %v2815_v17  ;;  %v2834_v17 = vld [vmem:[#allocation5 + $0x178] sm:$0xff]  }
  0x9f   :  { %2483 = vmatprep.subr.bf16.mxu0 %v2816_v26  ;;  %2546 = vmatpush3.bf16.msra.mxu1 %v2827_v59  ;;  %v264_v26 = vld [vmem:[#allocation2 + $0x470] sm:$0xff]  ;;  %v177_v59 = vld [vmem:[#allocation2 + $0x1b8] sm:$0xff] }
  0xa0   :  { %1051 = vmatmul.mubr.bf16.gmra.mrb[8].mxu0 %v302_v12  ;;  %2547 = vmatprep.subr.bf16.mxu1 %v2830_v3  ;;  %v263_v12 = vld [vmem:[#allocation2 + $0x468] sm:$0xff]  ;;  %v2845_v3 = vld [vmem:[#allocation5 + $0x210] sm:$0xff]  }
  0xa1   :  { %1148 = vmatmul.mubr.bf16.gmra.mrb[8].mxu1 %v304_v13  ;;  %1058 = vmatprep.mubr.bf16.mxu0 %v313_v14  ;;  %v273_v13 = vld [vmem:[#allocation2 + $0x4b8] sm:$0xff] }
  0xa2   :  { %1155 = vmatprep.mubr.bf16.mxu1 %v315_v16  ;;  %2484 = vmatpush3.bf16.msra.mxu0 %v2817_v27  ;;  %v265_v14 = vld [vmem:[#allocation2 + $0x478] sm:$0xff]  ;;  %v342_v16 = vpack.c.bf16 %v252_v8, %v242_v6  ;;  %v353_v19 = vpack.c.bf16 %v273_v13, %v263_v12  ;;  %v274_v27 = vld [vmem:[#allocation2 + $0x4c0] sm:$0xff]  ;;  %v176_v6 = vld [vmem:[#allocation2 + $0x1b0] sm:$0xff] }
  0xa3   :  { %2485 = vmatprep.subr.bf16.mxu0 %v2822_v44  ;;  %2548 = vmatpush3.bf16.msra.mxu1 %v2831_v5  ;;  %v355_v21 = vpack.c.bf16 %v275_v15, %v265_v14  ;;  %v354_v36 = vpack.c.bf16 %v274_v27, %v264_v26  ;;  %v157_v44 = vld [vmem:[#allocation2 + $0x118] sm:$0xff]  ;;  %v178_v8 = vld [vmem:[#allocation2 + $0x1c0] sm:$0xff]  ;;  %v199_v13 = vld [vmem:[#allocation2 + $0x268] sm:$0xff] }
  0xa4   :  { %2549 = vmatprep.subr.bf16.mxu1 %v2832_v7  ;;  %v297_v50 = vpack.c.bf16 %v157_v44, %v147_v43  ;;  %v2846_v5 = vld [vmem:[#allocation5 + $0x258] sm:$0xff]   ;;  %v168_v7 = vld [vmem:[#allocation2 + $0x170] sm:$0xff]  ;;  %v2848_v14 = vld [vmem:[#allocation5 + $0x260] sm:$0xff]  }
  0xa5   :  { %v2847_v12 = vld [vmem:[#allocation5 + $0x218] sm:$0xff]  }
  0xa6   :  { %2486 = vmatpush3.bf16.msra.mxu0 %v2823_v45  ;;  %v149_v45 = vld [vmem:[#allocation2 + $0xd8] sm:$0xff] }
  0xa7   :  { %2487 = vmatprep.subr.bf16.mxu0 %v2828_v62  ;;  %2550 = vmatpush3.bf16.msra.mxu1 %v2833_v11  ;;  %v299_v54 = vpack.c.bf16 %v159_v47, %v149_v45  ;;  %v179_v62 = vld [vmem:[#allocation2 + $0x1c8] sm:$0xff]  ;;  %v189_v11 = vld [vmem:[#allocation2 + $0x218] sm:$0xff] }
  0xa8   :  { %1059 = vmatmul.mubr.bf16.gmra.mrb[12].mxu0 %v312_v28  ;;  %2551 = vmatprep.subr.bf16.mxu1 %v2836_v22  ;;  %v2838_v28 = vld [vmem:[#allocation5 + $0x1f8] sm:$0xff]   ;;  %v2850_v22 = vld [vmem:[#allocation5 + $0x268] sm:$0xff]  }
  0xa9   :  { %1156 = vmatmul.mubr.bf16.gmra.mrb[12].mxu1 %v314_v30  ;;  %1066 = vmatprep.mubr.bf16.mxu0 %v323_v31  ;;  %v137_v30 = vld [vmem:[#allocation2 + $0x78] sm:$0xff]  ;;  %v239_v45 = vld [vmem:[#allocation2 + $0x3a8] sm:$0xff] }
  0xaa   :  { %1163 = vmatprep.mubr.bf16.mxu1 %v325_v33  ;;  %2488 = vmatpush3.bf16.msra.mxu0 %v2829_v0  ;;  %v2839_v31 = vld [vmem:[#allocation5 + $0x1b8] sm:$0xff]   ;;  %v287_v37 = vpack.c.bf16 %v137_v30, %v127_v29  ;;  %v298_v0 = vpack.c.bf16 %v158_v57, %v148_v56  ;;  %v2851_v29 = vld [vmem:[#allocation5 + $0x228] sm:$0xff]   ;;  %v2852_v30 = vld [vmem:[#allocation5 + $0x270] sm:$0xff]  }
  0xab   :  { %2489 = vmatprep.subr.bf16.mxu0 %v2834_v17  ;;  %2552 = vmatpush3.bf16.msra.mxu1 %v2837_v25  ;;  %v129_v33 = vld [vmem:[#allocation2 + $0x38] sm:$0xff]  ;;  %v317_v17 = vpack.c.bf16 %v197_v10, %v187_v9  ;;  %v207_v25 = vld [vmem:[#allocation2 + $0x2a8] sm:$0xff]  ;;  %v266_v10 = vld [vmem:[#allocation2 + $0x480] sm:$0xff] }
  0xac   :  { %2553 = vmatprep.subr.bf16.mxu1 %v2838_v28  ;;  %v289_v38 = vpack.c.bf16 %v139_v35, %v129_v33  ;;  %v217_v26 = vld [vmem:[#allocation2 + $0x2f8] sm:$0xff]  ;;  %v219_v28 = vld [vmem:[#allocation2 + $0x308] sm:$0xff]  ;;  %v2853_v35 = vld [vmem:[#allocation5 + $0x230] sm:$0xff]  }
  0xad   :  { %v209_v27 = vld [vmem:[#allocation2 + $0x2b8] sm:$0xff]  ;;  %v327_v33 = vpack.c.bf16 %v217_v26, %v207_v25  ;;  %v259_v57 = vld [vmem:[#allocation2 + $0x448] sm:$0xff]  ;;  %v150_v25 = vld [vmem:[#allocation2 + $0xe0] sm:$0xff] }
  0xae   :  { %2490 = vmatpush3.bf16.msra.mxu0 %v2835_v20  ;;  %v186_v20 = vld [vmem:[#allocation2 + $0x200] sm:$0xff]  ;;  %v2855_v43 = vld [vmem:[#allocation5 + $0x238] sm:$0xff]   ;;  %v160_v26 = vld [vmem:[#allocation2 + $0x130] sm:$0xff] }
  0xaf   :  { %2603 = vmatprep.subr.bf16.mxu0 %v2840_v32  ;;  %2554 = vmatpush3.bf16.msra.mxu1 %v2839_v31  ;;  %v318_v32 = vpack.c.bf16 %v198_v24, %v188_v23  ;;  %v229_v44 = vld [vmem:[#allocation2 + $0x358] sm:$0xff] }
  0xb0   :  { %1067 = vmatmul.mubr.bf16.gmra.mrb[16].mxu0 %v322_v46  ;;  %v286_v46 = vpack.c.bf16 %v136_v40, %v126_v39  ;;  %v208_v39 = vld [vmem:[#allocation2 + $0x2b0] sm:$0xff]  ;;  %v218_v40 = vld [vmem:[#allocation2 + $0x300] sm:$0xff]  ;;  %v249_v56 = vld [vmem:[#allocation2 + $0x3f8] sm:$0xff] }
  0xb1   :  { %1164 = vmatmul.mubr.bf16.gmra.mrb[16].mxu1 %v324_v48  ;;  %1074 = vmatprep.mubr.bf16.mxu0 %v333_v49  ;;  %v2841_v48 = vld [vmem:[#allocation5 + $0x200] sm:$0xff]   ;;  %v288_v49 = vpack.c.bf16 %v138_v42, %v128_v41  ;;  %v227_v41 = vld [vmem:[#allocation2 + $0x348] sm:$0xff]  ;;  %v237_v42 = vld [vmem:[#allocation2 + $0x398] sm:$0xff]  ;;  %v328_v47 = vpack.c.bf16 %v218_v40, %v208_v39 }
  0xb2   :  { %1171 = vmatprep.mubr.bf16.mxu1 %v335_v51  ;;  %v2842_v51 = vld [vmem:[#allocation5 + $0x248] sm:$0xff]   ;;  %v221_v40 = vld [vmem:[#allocation2 + $0x318] sm:$0xff] }
  0xb3   :  { %v211_v39 = vld [vmem:[#allocation2 + $0x2c8] sm:$0xff] }
  0xb8   :  { %1075 = vmatmul.mubr.bf16.gmra.mrb[20].mxu0 %v332_v63  ;;  %v296_v63 = vpack.c.bf16 %v156_v53, %v146_v52  ;;  %v228_v52 = vld [vmem:[#allocation2 + $0x350] sm:$0xff]  ;;  %v238_v53 = vld [vmem:[#allocation2 + $0x3a0] sm:$0xff] }
  0xb9   :  { %1172 = vmatmul.mubr.bf16.gmra.mrb[20].mxu1 %v334_v1  ;;  %1082 = vmatprep.mubr.bf16.mxu0 %v343_v2  ;;  %v307_v1 = vpack.c.bf16 %v177_v59, %v167_v58  ;;  %v309_v2 = vpack.c.bf16 %v179_v62, %v169_v61  ;;  %v338_v59 = vpack.c.bf16 %v238_v53, %v228_v52  ;;  %v246_v62 = vld [vmem:[#allocation2 + $0x3e0] sm:$0xff]  ;;  %v261_v52 = vld [vmem:[#allocation2 + $0x458] sm:$0xff] }
  0xba   :  { %1179 = vmatprep.mubr.bf16.mxu1 %v345_v4  ;;  %v166_v4 = vld [vmem:[#allocation2 + $0x160] sm:$0xff]  ;;  %v349_v61 = vpack.c.bf16 %v259_v57, %v249_v56  ;;  %v260_v56 = vld [vmem:[#allocation2 + $0x450] sm:$0xff]  ;;  %v271_v57 = vld [vmem:[#allocation2 + $0x4a8] sm:$0xff] }
  0xbb   :  { %v306_v15 = vpack.c.bf16 %v176_v6, %v166_v4  ;;  %v269_v4 = vld [vmem:[#allocation2 + $0x498] sm:$0xff] }
  0xc0   :  { %1083 = vmatmul.mubr.bf16.gmra.mrb[24].mxu0 %v342_v16  ;;  %v308_v16 = vpack.c.bf16 %v178_v8, %v168_v7 }
  0xc1   :  { %1180 = vmatmul.mubr.bf16.gmra.mrb[24].mxu1 %v344_v18  ;;  %1090 = vmatprep.mubr.bf16.mxu0 %v353_v19  ;;  %v319_v18 = vpack.c.bf16 %v199_v13, %v189_v11  ;;  %v2849_v19 = vld [vmem:[#allocation5 + $0x220] sm:$0xff]   ;;  %v276_v11 = vld [vmem:[#allocation2 + $0x4d0] sm:$0xff] }
  0xc2   :  { %1187 = vmatprep.mubr.bf16.mxu1 %v355_v21  ;;  %v196_v21 = vld [vmem:[#allocation2 + $0x250] sm:$0xff]  ;;  %v278_v13 = vld [vmem:[#allocation2 + $0x4e0] sm:$0xff] }
  0xc3   :  { %v316_v31 = vpack.c.bf16 %v196_v21, %v186_v20  ;;  %v140_v20 = vld [vmem:[#allocation2 + $0x90] sm:$0xff]  ;;  %v151_v21 = vld [vmem:[#allocation2 + $0xe8] sm:$0xff] }
  0xc8   :  { %1091 = vmatmul.mubr.bf16.gmra.mrb[28].mxu0 %v352_v34  ;;  %v329_v34 = vpack.c.bf16 %v219_v28, %v209_v27  ;;  %v171_v27 = vld [vmem:[#allocation2 + $0x188] sm:$0xff]  ;;  %v181_v28 = vld [vmem:[#allocation2 + $0x1d8] sm:$0xff] }
  0xc9   :  { %1188 = vmatmul.mubr.bf16.gmra.mrb[28].mxu1 %v354_v36  ;;  %1228 = vmatprep.mubr.bf16.mxu0 %v287_v37  ;;  %v2854_v36 = vld [vmem:[#allocation5 + $0x278] sm:$0xff]   ;;  %v206_v37 = vld [vmem:[#allocation2 + $0x2a0] sm:$0xff] }
  0xca   :  { %1325 = vmatprep.mubr.bf16.mxu1 %v289_v38  ;;  %v216_v38 = vld [vmem:[#allocation2 + $0x2f0] sm:$0xff] }
  0xd0   :  { %1229 = vmatmul.mubr.bf16.vlgmr.msra.gmra.mrb[32].mxu0 %v286_v46  ;;  %v326_v46 = vpack.c.bf16 %v216_v38, %v206_v37  ;;  %v190_v37 = vld [vmem:[#allocation2 + $0x220] sm:$0xff]  ;;  %v200_v38 = vld [vmem:[#allocation2 + $0x270] sm:$0xff] }
  0xd1   :  { %2604 = vmatpush3.bf16.msra.mxu0 %v2841_v48  ;;  %1326 = vmatmul.mubr.bf16.vlgmr.msra.gmra.mrb[32].mxu1 %v288_v49  ;;  %v337_v48 = vpack.c.bf16 %v237_v42, %v227_v41  ;;  %v339_v49 = vpack.c.bf16 %v239_v45, %v229_v44  ;;  %v320_v41 = vpack.c.bf16 %v200_v38, %v190_v37  ;;  %v220_v44 = vld [vmem:[#allocation2 + $0x310] sm:$0xff]  ;;  %v231_v45 = vld [vmem:[#allocation2 + $0x368] sm:$0xff] }
  0xd2   :  { %1236 = vmatprep.mubr.bf16.mxu0 %v297_v50  ;;  %2605 = vmatprep.subr.bf16.mxu0 %v2842_v51  ;;  %v226_v50 = vld [vmem:[#allocation2 + $0x340] sm:$0xff]  ;;  %v236_v51 = vld [vmem:[#allocation2 + $0x390] sm:$0xff]  ;;  %v331_v42 = vpack.c.bf16 %v221_v40, %v211_v39 }
  0xd3   :  { %1333 = vmatprep.mubr.bf16.mxu1 %v299_v54  ;;  %v247_v54 = vld [vmem:[#allocation2 + $0x3e8] sm:$0xff]  ;;  %v336_v58 = vpack.c.bf16 %v236_v51, %v226_v50  ;;  %v240_v50 = vld [vmem:[#allocation2 + $0x3b0] sm:$0xff] }
  0xd4   :  { %v251_v51 = vld [vmem:[#allocation2 + $0x408] sm:$0xff] }
  0xd5   :  { %2606 = vmatpush3.bf16.msra.mxu0 %v2843_v55  ;;  %v257_v55 = vld [vmem:[#allocation2 + $0x438] sm:$0xff] }
  0xd6   :  { %2607 = vmatprep.subr.bf16.mxu0 %v2844_v60  ;;  %v347_v60 = vpack.c.bf16 %v257_v55, %v247_v54  ;;  %v351_v54 = vpack.c.bf16 %v261_v52, %v251_v51  ;;  %v250_v55 = vld [vmem:[#allocation2 + $0x400] sm:$0xff] }
  0xd8   :  { %1237 = vmatmul.mubr.bf16.gmra.mrb[36].mxu0 %v296_v63  ;;  %v256_v63 = vld [vmem:[#allocation2 + $0x430] sm:$0xff] }
  0xd9   :  { %1334 = vmatmul.mubr.bf16.gmra.mrb[36].mxu1 %v298_v0  ;;  %1244 = vmatprep.mubr.bf16.mxu0 %v307_v1  ;;  %v248_v0 = vld [vmem:[#allocation2 + $0x3f0] sm:$0xff]  ;;  %v258_v1 = vld [vmem:[#allocation2 + $0x440] sm:$0xff]  ;;  %v346_v6 = vpack.c.bf16 %v256_v63, %v246_v62 }
  0xda   :  { %1341 = vmatprep.mubr.bf16.mxu1 %v309_v2  ;;  %2608 = vmatpush3.bf16.msra.mxu0 %v2845_v3  ;;  %v267_v2 = vld [vmem:[#allocation2 + $0x488] sm:$0xff]  ;;  %v277_v3 = vld [vmem:[#allocation2 + $0x4d8] sm:$0xff]  ;;  %v348_v7 = vpack.c.bf16 %v258_v1, %v248_v0  ;;  %v280_v62 = vld [vmem:[#allocation2 + $0x4f0] sm:$0xff] }
  0xdb   :  { %2609 = vmatprep.subr.bf16.mxu0 %v2846_v5  ;;  %v279_v5 = vld [vmem:[#allocation2 + $0x4e8] sm:$0xff]  ;;  %v357_v8 = vpack.c.bf16 %v277_v3, %v267_v2 }
  0xdc   :  { %v359_v9 = vpack.c.bf16 %v279_v5, %v269_v4 }
  0xde   :  { %2610 = vmatpush3.bf16.msra.mxu0 %v2847_v12  ;;  %v268_v12 = vld [vmem:[#allocation2 + $0x490] sm:$0xff] }
  0xdf   :  { %2611 = vmatprep.subr.bf16.mxu0 %v2848_v14  ;;  %v131_v14 = vld [vmem:[#allocation2 + $0x48] sm:$0xff] }
  0xe0   :  { %1245 = vmatmul.mubr.bf16.gmra.mrb[40].mxu0 %v306_v15  ;;  %v141_v15 = vld [vmem:[#allocation2 + $0x98] sm:$0xff] }
  0xe1   :  { %1342 = vmatmul.mubr.bf16.gmra.mrb[40].mxu1 %v308_v16  ;;  %1252 = vmatprep.mubr.bf16.mxu0 %v317_v17  ;;  %v356_v16 = vpack.c.bf16 %v276_v11, %v266_v10  ;;  %v358_v17 = vpack.c.bf16 %v278_v13, %v268_v12 }
  0xe2   :  { %1349 = vmatprep.mubr.bf16.mxu1 %v319_v18  ;;  %2612 = vmatpush3.bf16.msra.mxu0 %v2849_v19  ;;  %v291_v18 = vpack.c.bf16 %v141_v15, %v131_v14  ;;  %v130_v19 = vld [vmem:[#allocation2 + $0x40] sm:$0xff] }
  0xe3   :  { %2613 = vmatprep.subr.bf16.mxu0 %v2850_v22  ;;  %v161_v22 = vld [vmem:[#allocation2 + $0x138] sm:$0xff]  ;;  %v290_v23 = vpack.c.bf16 %v140_v20, %v130_v19 }
  0xe4   :  { %v301_v24 = vpack.c.bf16 %v161_v22, %v151_v21 }
  0xe6   :  { %2614 = vmatpush3.bf16.msra.mxu0 %v2851_v29  ;;  %v300_v29 = vpack.c.bf16 %v160_v26, %v150_v25 }
  0xe7   :  { %2615 = vmatprep.subr.bf16.mxu0 %v2852_v30  ;;  %v311_v30 = vpack.c.bf16 %v181_v28, %v171_v27 }
  0xe8   :  { %1253 = vmatmul.mubr.bf16.gmra.mrb[44].mxu0 %v316_v31  ;;  %v170_v31 = vld [vmem:[#allocation2 + $0x180] sm:$0xff] }
  0xe9   :  { %1350 = vmatmul.mubr.bf16.gmra.mrb[44].mxu1 %v318_v32  ;;  %1260 = vmatprep.mubr.bf16.mxu0 %v327_v33  ;;  %v180_v32 = vld [vmem:[#allocation2 + $0x1d0] sm:$0xff]  ;;  %v191_v33 = vld [vmem:[#allocation2 + $0x228] sm:$0xff] }
  0xea   :  { %1357 = vmatprep.mubr.bf16.mxu1 %v329_v34  ;;  %2616 = vmatpush3.bf16.msra.mxu0 %v2853_v35  ;;  %v201_v34 = vld [vmem:[#allocation2 + $0x278] sm:$0xff]  ;;  %v310_v35 = vpack.c.bf16 %v180_v32, %v170_v31 }
  0xeb   :  { %2617 = vmatprep.subr.bf16.mxu0 %v2854_v36  ;;  %v321_v36 = vpack.c.bf16 %v201_v34, %v191_v33 }
  0xee   :  { %2618 = vmatpush3.bf16.msra.mxu0 %v2855_v43  ;;  %v210_v43 = vld [vmem:[#allocation2 + $0x2c0] sm:$0xff] }
  0xf0   :  { %1261 = vmatmul.mubr.bf16.gmra.mrb[48].mxu0 %v326_v46  ;;  %v241_v46 = vld [vmem:[#allocation2 + $0x3b8] sm:$0xff] }
  0xf1   :  { %1358 = vmatmul.mubr.bf16.gmra.mrb[48].mxu1 %v328_v47  ;;  %1268 = vmatprep.mubr.bf16.mxu0 %v337_v48  ;;  %v330_v47 = vpack.c.bf16 %v220_v44, %v210_v43  ;;  %v341_v48 = vpack.c.bf16 %v241_v46, %v231_v45 }
  0xf2   :  { %1365 = vmatprep.mubr.bf16.mxu1 %v339_v49  ;;  %v230_v49 = vld [vmem:[#allocation2 + $0x360] sm:$0xff] }
  0xf3   :  { %v340_v53 = vpack.c.bf16 %v240_v50, %v230_v49 }
  0xf8   :  { %1269 = vmatmul.mubr.bf16.gmra.mrb[52].mxu0 %v336_v58  ;;  %v281_v58 = vld [vmem:[#allocation2 + $0x4f8] sm:$0xff] }
  0xf9   :  { %1366 = vmatmul.mubr.bf16.gmra.mrb[52].mxu1 %v338_v59  ;;  %1276 = vmatprep.mubr.bf16.mxu0 %v347_v60  ;;  %v350_v59 = vpack.c.bf16 %v260_v56, %v250_v55  ;;  %v361_v60 = vpack.c.bf16 %v281_v58, %v271_v57 }
  0xfa   :  { %1373 = vmatprep.mubr.bf16.mxu1 %v349_v61  ;;  %v270_v61 = vld [vmem:[#allocation2 + $0x4a0] sm:$0xff] }
  0xfb   :  { %v360_v63 = vpack.c.bf16 %v280_v62, %v270_v61 }
 0x100   :  { %1277 = vmatmul.mubr.bf16.gmra.mrb[56].mxu0 %v346_v6 }
 0x101   :  { %1374 = vmatmul.mubr.bf16.gmra.mrb[56].mxu1 %v348_v7  ;;  %1284 = vmatprep.mubr.bf16.mxu0 %v357_v8 }
 0x102   :  { %1381 = vmatprep.mubr.bf16.mxu1 %v359_v9 }
 0x108   :  { %1285 = vmatmul.mubr.bf16.gmra.mrb[60].mxu0 %v356_v16 }
 0x109   :  { %1382 = vmatmul.mubr.bf16.gmra.mrb[60].mxu1 %v358_v17  ;;  %1422 = vmatprep.mubr.bf16.mxu0 %v291_v18 }
 0x110   :  { %1423 = vmatmul.mubr.bf16.vlgmr.msra.gmra.mrb[64].mxu0 %v290_v23 }
 0x111   :  { %1430 = vmatprep.mubr.bf16.mxu0 %v301_v24 }
 0x118   :  { %1431 = vmatmul.mubr.bf16.gmra.mrb[68].mxu0 %v300_v29 }
 0x119   :  { %1438 = vmatprep.mubr.bf16.mxu0 %v311_v30 }
 0x120   :  { %1439 = vmatmul.mubr.bf16.gmra.mrb[72].mxu0 %v310_v35 }
 0x121   :  { %1446 = vmatprep.mubr.bf16.mxu0 %v321_v36 }
 0x128   :  { %1447 = vmatmul.mubr.bf16.gmra.mrb[76].mxu0 %v320_v41 }
 0x129   :  { %1454 = vmatprep.mubr.bf16.mxu0 %v331_v42 }
 0x130   :  { %1455 = vmatmul.mubr.bf16.gmra.mrb[80].mxu0 %v330_v47 }
 0x131   :  { %1462 = vmatprep.mubr.bf16.mxu0 %v341_v48 }
 0x138   :  { %1463 = vmatmul.mubr.bf16.gmra.mrb[84].mxu0 %v340_v53 }
 0x139   :  { %1470 = vmatprep.mubr.bf16.mxu0 %v351_v54 }
 0x140   :  { %1471 = vmatmul.mubr.bf16.gmra.mrb[88].mxu0 %v350_v59 }
 0x141   :  { %1478 = vmatprep.mubr.bf16.mxu0 %v361_v60 }
 0x148   :  { %1479 = vmatmul.mubr.bf16.gmra.mrb[92].mxu0 %v360_v63 }
 0x163   :  { %v2363_v0 = vpop.f32.mrb[0].mxu0 }
 0x164   :  { %v2427_v1 = vpop.f32.mrb[0].mxu1  ;;  %v2364_v2 = vpop.f32.mrb[1].mxu0 }
 0x165   :  { %v2365_v3 = vadd.f32 %v2364_v2, %v2363_v0  ;;  %v2428_v4 = vpop.f32.mrb[1].mxu1  ;;  %v2366_v5 = vpop.f32.mrb[2].mxu0 }
 0x166   :  { %v2429_v6 = vadd.f32 %v2428_v4, %v2427_v1  ;;  %v2430_v7 = vpop.f32.mrb[2].mxu1  ;;  %v2367_v8 = vpop.f32.mrb[3].mxu0 }
 0x167   :  { %v2368_v9 = vadd.f32 %v2367_v8, %v2366_v5  ;;  %v2431_v10 = vpop.f32.mrb[3].mxu1 }
 0x168   :  { %v3200_v11 = vadd.f32 %v2429_v6, %v2365_v3  ;;  %v2432_v12 = vadd.f32 %v2431_v10, %v2430_v7 }
 0x16a   :  { %v3202_v13 = vadd.f32 %v2432_v12, %v2368_v9 }
 0x16b   :  { %v2369_v14 = vpop.f32.mrb[4].mxu0 }
 0x16c   :  { %v2433_v15 = vpop.f32.mrb[4].mxu1  ;;  %v2370_v16 = vpop.f32.mrb[5].mxu0 }
 0x16d   :  { %v2371_v17 = vadd.f32 %v2370_v16, %v2369_v14  ;;  %v2434_v18 = vpop.f32.mrb[5].mxu1  ;;  %v2372_v19 = vpop.f32.mrb[6].mxu0 }
 0x16e   :  { %v2435_v20 = vadd.f32 %v2434_v18, %v2433_v15  ;;  %v2436_v21 = vpop.f32.mrb[6].mxu1  ;;  %v2373_v22 = vpop.f32.mrb[7].mxu0 }
 0x16f   :  { %v2374_v23 = vadd.f32 %v2373_v22, %v2372_v19  ;;  %v2437_v24 = vpop.f32.mrb[7].mxu1 }
 0x170   :  { %v3204_v25 = vadd.f32 %v2435_v20, %v2371_v17  ;;  %v2438_v26 = vadd.f32 %v2437_v24, %v2436_v21 }
 0x172   :  { %v3206_v27 = vadd.f32 %v2438_v26, %v2374_v23 }
 0x173   :  { %v2375_v28 = vpop.f32.mrb[8].mxu0 }
 0x174   :  { %v2439_v29 = vpop.f32.mrb[8].mxu1  ;;  %v2376_v30 = vpop.f32.mrb[9].mxu0 }
 0x175   :  { %v2377_v31 = vadd.f32 %v2376_v30, %v2375_v28  ;;  %v2440_v32 = vpop.f32.mrb[9].mxu1  ;;  %v2378_v33 = vpop.f32.mrb[10].mxu0 }
 0x176   :  { %v2441_v34 = vadd.f32 %v2440_v32, %v2439_v29  ;;  %v2442_v35 = vpop.f32.mrb[10].mxu1  ;;  %v2379_v36 = vpop.f32.mrb[11].mxu0 }
 0x177   :  { %v2380_v37 = vadd.f32 %v2379_v36, %v2378_v33  ;;  %v2443_v38 = vpop.f32.mrb[11].mxu1 }
 0x178   :  { %v3208_v39 = vadd.f32 %v2441_v34, %v2377_v31  ;;  %v2444_v40 = vadd.f32 %v2443_v38, %v2442_v35 }
 0x17a   :  { %v3210_v41 = vadd.f32 %v2444_v40, %v2380_v37 }
 0x17b   :  { %v2381_v42 = vpop.f32.mrb[12].mxu0 }
 0x17c   :  { %v2445_v43 = vpop.f32.mrb[12].mxu1  ;;  %v2382_v44 = vpop.f32.mrb[13].mxu0 }
 0x17d   :  { %v2383_v45 = vadd.f32 %v2382_v44, %v2381_v42  ;;  %v2446_v46 = vpop.f32.mrb[13].mxu1  ;;  %v2384_v47 = vpop.f32.mrb[14].mxu0 }
 0x17e   :  { %v2447_v48 = vadd.f32 %v2446_v46, %v2445_v43  ;;  %v2448_v49 = vpop.f32.mrb[14].mxu1  ;;  %v2385_v50 = vpop.f32.mrb[15].mxu0  ;;  %v2856_v46 = vld [vmem:[#allocation7] sm:$0xff]  }
 0x17f   :  { %v2386_v51 = vadd.f32 %v2385_v50, %v2384_v47  ;;  %v2449_v52 = vpop.f32.mrb[15].mxu1  ;;  %2699 = vmatprep.subr.bf16.mxu1 %v2856_v46 }
 0x180   :  { %v3212_v53 = vadd.f32 %v2447_v48, %v2383_v45  ;;  %v2450_v54 = vadd.f32 %v2449_v52, %v2448_v49  ;;  %2700 = vmatpush3.bf16.msra.mxu1 %v2856_v46 }
 0x182   :  { %v3214_v55 = vadd.f32 %v2450_v54, %v2386_v51 }
 0x183   :  { %v2387_v56 = vpop.f32.mrb[16].mxu0 }
 0x184   :  { %v2451_v57 = vpop.f32.mrb[16].mxu1  ;;  %v2388_v58 = vpop.f32.mrb[17].mxu0 }
 0x185   :  { %v2389_v59 = vadd.f32 %v2388_v58, %v2387_v56  ;;  %v2452_v60 = vpop.f32.mrb[17].mxu1  ;;  %v2390_v61 = vpop.f32.mrb[18].mxu0 }
 0x186   :  { %v2453_v62 = vadd.f32 %v2452_v60, %v2451_v57  ;;  %v2454_v63 = vpop.f32.mrb[18].mxu1  ;;  %v2391_v0 = vpop.f32.mrb[19].mxu0 }
 0x187   :  { %v2392_v1 = vadd.f32 %v2391_v0, %v2390_v61  ;;  %v2455_v2 = vpop.f32.mrb[19].mxu1 }
 0x188   :  { %v3216_v3 = vadd.f32 %v2453_v62, %v2389_v59  ;;  %v2456_v4 = vadd.f32 %v2455_v2, %v2454_v63 }
 0x18a   :  { %v3218_v5 = vadd.f32 %v2456_v4, %v2392_v1 }
 0x18b   :  { %v2393_v6 = vpop.f32.mrb[20].mxu0 }
 0x18c   :  { %v2457_v7 = vpop.f32.mrb[20].mxu1  ;;  %v2394_v8 = vpop.f32.mrb[21].mxu0 }
 0x18d   :  { %v2395_v9 = vadd.f32 %v2394_v8, %v2393_v6  ;;  %v2458_v10 = vpop.f32.mrb[21].mxu1  ;;  %v2396_v12 = vpop.f32.mrb[22].mxu0 }
 0x18e   :  { %v2459_v14 = vadd.f32 %v2458_v10, %v2457_v7  ;;  %v2460_v15 = vpop.f32.mrb[22].mxu1  ;;  %v2397_v16 = vpop.f32.mrb[23].mxu0 }
 0x18f   :  { %v2398_v17 = vadd.f32 %v2397_v16, %v2396_v12  ;;  %v2461_v18 = vpop.f32.mrb[23].mxu1 }
 0x190   :  { %v3220_v19 = vadd.f32 %v2459_v14, %v2395_v9  ;;  %v2462_v20 = vadd.f32 %v2461_v18, %v2460_v15 }
 0x192   :  { %v3222_v21 = vadd.f32 %v2462_v20, %v2398_v17 }
 0x193   :  { %v2399_v22 = vpop.f32.mrb[24].mxu0 }
 0x194   :  { %v2463_v23 = vpop.f32.mrb[24].mxu1  ;;  %v2400_v24 = vpop.f32.mrb[25].mxu0 }
 0x195   :  { %v2401_v26 = vadd.f32 %v2400_v24, %v2399_v22  ;;  %v2464_v28 = vpop.f32.mrb[25].mxu1  ;;  %v2402_v29 = vpop.f32.mrb[26].mxu0 }
 0x196   :  { %v2465_v30 = vadd.f32 %v2464_v28, %v2463_v23  ;;  %v2466_v31 = vpop.f32.mrb[26].mxu1  ;;  %v2403_v32 = vpop.f32.mrb[27].mxu0 }
 0x197   :  { %v2404_v33 = vadd.f32 %v2403_v32, %v2402_v29  ;;  %v2467_v34 = vpop.f32.mrb[27].mxu1 }
 0x198   :  { %v3224_v35 = vadd.f32 %v2465_v30, %v2401_v26  ;;  %v2468_v36 = vadd.f32 %v2467_v34, %v2466_v31 }
 0x19a   :  { %v3226_v37 = vadd.f32 %v2468_v36, %v2404_v33 }
 0x19b   :  { %v2405_v38 = vpop.f32.mrb[28].mxu0 }
 0x19c   :  { %v2469_v40 = vpop.f32.mrb[28].mxu1  ;;  %v2406_v42 = vpop.f32.mrb[29].mxu0 }
 0x19d   :  { %v2407_v43 = vadd.f32 %v2406_v42, %v2405_v38  ;;  %v2470_v44 = vpop.f32.mrb[29].mxu1  ;;  %v2408_v45 = vpop.f32.mrb[30].mxu0 }
 0x19e   :  { %v2471_v47 = vadd.f32 %v2470_v44, %v2469_v40  ;;  %v2472_v48 = vpop.f32.mrb[30].mxu1  ;;  %v2409_v49 = vpop.f32.mrb[31].mxu0 }
 0x19f   :  { %v2410_v50 = vadd.f32 %v2409_v49, %v2408_v45  ;;  %v2473_v51 = vpop.f32.mrb[31].mxu1 }
 0x1a0   :  { %v3228_v52 = vadd.f32 %v2471_v47, %v2407_v43  ;;  %v2474_v54 = vadd.f32 %v2473_v51, %v2472_v48  ;;  %v2857_v48 = vld [vmem:[#allocation7 + $0x8] sm:$0xff]  }
 0x1a1   :  { %2701 = vmatprep.subr.bf16.mxu1 %v2857_v48 }
 0x1a2   :  { %v3230_v56 = vadd.f32 %v2474_v54, %v2410_v50  ;;  %2702 = vmatpush3.bf16.msra.mxu1 %v2857_v48 }
 0x1a3   :  { %v2491_v57 = vpop.f32.mrb[32].mxu0 }
 0x1a4   :  { %v2492_v58 = vpop.f32.mrb[33].mxu0  ;;  %v2555_v59 = vpop.f32.mrb[32].mxu1 }
 0x1a5   :  { %v2493_v60 = vadd.f32 %v2492_v58, %v2491_v57  ;;  %v2494_v61 = vpop.f32.mrb[34].mxu0  ;;  %v2556_v62 = vpop.f32.mrb[33].mxu1 }
 0x1a6   :  { %v2495_v63 = vpop.f32.mrb[35].mxu0  ;;  %v2557_v0 = vadd.f32 %v2556_v62, %v2555_v59  ;;  %v2558_v1 = vpop.f32.mrb[34].mxu1 }
 0x1a7   :  { %v1231_v2 = vadd.f32 %v2493_v60, %v3200_v11  ;;  %v2496_v4 = vadd.f32 %v2495_v63, %v2494_v61  ;;  %v2559_v6 = vpop.f32.mrb[35].mxu1  ;;  %v2858_v60 = vld [vmem:[#allocation7 + $0x10] sm:$0xff]  }
 0x1a8   :  { %v2560_v7 = vadd.f32 %v2559_v6, %v2558_v1  ;;  %2703 = vmatprep.subr.bf16.mxu1 %v2858_v60  ;;  %v2859_v6 = vld [vmem:[#allocation7 + $0x18] sm:$0xff]  }
 0x1a9   :  { %v1234_v8 = vadd.f32 %v2496_v4, %v3202_v13  ;;  %v3234_v9 = vadd.f32 %v2557_v0, %v1231_v2  ;;  %2704 = vmatpush3.bf16.msra.mxu1 %v2858_v60 }
 0x1aa   :  { %2705 = vmatprep.subr.bf16.mxu1 %v2859_v6 }
 0x1ab   :  { %v3236_v10 = vadd.f32 %v2560_v7, %v1234_v8  ;;  %v2497_v12 = vpop.f32.mrb[36].mxu0 }
 0x1ac   :  { %v2498_v14 = vpop.f32.mrb[37].mxu0  ;;  %v2561_v15 = vpop.f32.mrb[36].mxu1 }
 0x1ad   :  { %v2499_v16 = vadd.f32 %v2498_v14, %v2497_v12  ;;  %v2500_v17 = vpop.f32.mrb[38].mxu0  ;;  %v2562_v18 = vpop.f32.mrb[37].mxu1  ;;  %2706 = vmatpush3.bf16.msra.mxu1 %v2859_v6 }
 0x1ae   :  { %v2501_v20 = vpop.f32.mrb[39].mxu0  ;;  %v2563_v22 = vadd.f32 %v2562_v18, %v2561_v15  ;;  %v2564_v23 = vpop.f32.mrb[38].mxu1 }
 0x1af   :  { %v1239_v11 = vadd.f32 %v2499_v16, %v3204_v25  ;;  %v2502_v24 = vadd.f32 %v2501_v20, %v2500_v17  ;;  %v2565_v26 = vpop.f32.mrb[39].mxu1  ;;  %v2860_v17 = vld [vmem:[#allocation7 + $0x20] sm:$0xff]  }
 0x1b0   :  { %v2566_v28 = vadd.f32 %v2565_v26, %v2564_v23  ;;  %2707 = vmatprep.subr.bf16.mxu1 %v2860_v17 }
 0x1b1   :  { %v1242_v13 = vadd.f32 %v2502_v24, %v3206_v27  ;;  %v3240_v29 = vadd.f32 %v2563_v22, %v1239_v11  ;;  %2708 = vmatpush3.bf16.msra.mxu1 %v2860_v17 }
 0x1b3   :  { %v3242_v30 = vadd.f32 %v2566_v28, %v1242_v13  ;;  %v2503_v31 = vpop.f32.mrb[40].mxu0  ;;  %v2861_v13 = vld [vmem:[#allocation7 + $0x28] sm:$0xff]  }
 0x1b4   :  { %v2504_v32 = vpop.f32.mrb[41].mxu0  ;;  %v2567_v33 = vpop.f32.mrb[40].mxu1  ;;  %2709 = vmatprep.subr.bf16.mxu1 %v2861_v13 }
 0x1b5   :  { %v2505_v34 = vadd.f32 %v2504_v32, %v2503_v31  ;;  %v2506_v36 = vpop.f32.mrb[42].mxu0  ;;  %v2568_v38 = vpop.f32.mrb[41].mxu1  ;;  %v2862_v31 = vld [vmem:[#allocation7 + $0x30] sm:$0xff]   ;;  %2710 = vmatpush3.bf16.msra.mxu1 %v2861_v13 }
 0x1b6   :  { %v2507_v40 = vpop.f32.mrb[43].mxu0  ;;  %v2569_v42 = vadd.f32 %v2568_v38, %v2567_v33  ;;  %v2570_v43 = vpop.f32.mrb[42].mxu1  ;;  %2711 = vmatprep.subr.bf16.mxu1 %v2862_v31 }
 0x1b7   :  { %v1247_v25 = vadd.f32 %v2505_v34, %v3208_v39  ;;  %v2508_v44 = vadd.f32 %v2507_v40, %v2506_v36  ;;  %v2571_v45 = vpop.f32.mrb[43].mxu1 }
 0x1b8   :  { %v2572_v46 = vadd.f32 %v2571_v45, %v2570_v43 }
 0x1b9   :  { %v1250_v27 = vadd.f32 %v2508_v44, %v3210_v41  ;;  %v3246_v47 = vadd.f32 %v2569_v42, %v1247_v25  ;;  %v2863_v42 = vld [vmem:[#allocation7 + $0x38] sm:$0xff]   ;;  %2712 = vmatpush3.bf16.msra.mxu1 %v2862_v31 }
 0x1ba   :  { %2713 = vmatprep.subr.bf16.mxu1 %v2863_v42 }
 0x1bb   :  { %v3248_v49 = vadd.f32 %v2572_v46, %v1250_v27  ;;  %v2509_v50 = vpop.f32.mrb[44].mxu0 }
 0x1bc   :  { %v2510_v51 = vpop.f32.mrb[45].mxu0  ;;  %v2573_v54 = vpop.f32.mrb[44].mxu1 }
 0x1bd   :  { %v2511_v57 = vadd.f32 %v2510_v51, %v2509_v50  ;;  %v2512_v58 = vpop.f32.mrb[46].mxu0  ;;  %v2574_v59 = vpop.f32.mrb[45].mxu1  ;;  %2714 = vmatpush3.bf16.msra.mxu1 %v2863_v42 }
 0x1be   :  { %v2513_v39 = vpop.f32.mrb[47].mxu0  ;;  %v2575_v61 = vadd.f32 %v2574_v59, %v2573_v54  ;;  %v2576_v62 = vpop.f32.mrb[46].mxu1 }
 0x1bf   :  { %v1255_v63 = vadd.f32 %v2511_v57, %v3212_v53  ;;  %v2514_v41 = vadd.f32 %v2513_v39, %v2512_v58  ;;  %v2577_v0 = vpop.f32.mrb[47].mxu1 }
 0x1c0   :  { %v2578_v1 = vadd.f32 %v2577_v0, %v2576_v62 }
 0x1c1   :  { %v1258_v2 = vadd.f32 %v2514_v41, %v3214_v55  ;;  %v3252_v4 = vadd.f32 %v2575_v61, %v1255_v63 }
 0x1c3   :  { %v3254_v7 = vadd.f32 %v2578_v1, %v1258_v2  ;;  %v2515_v8 = vpop.f32.mrb[48].mxu0 }
 0x1c4   :  { %v2516_v12 = vpop.f32.mrb[49].mxu0  ;;  %v2579_v14 = vpop.f32.mrb[48].mxu1 }
 0x1c5   :  { %v2517_v15 = vadd.f32 %v2516_v12, %v2515_v8  ;;  %v2518_v16 = vpop.f32.mrb[50].mxu0  ;;  %v2580_v53 = vpop.f32.mrb[49].mxu1 }
 0x1c6   :  { %v2519_v18 = vpop.f32.mrb[51].mxu0  ;;  %v2581_v20 = vadd.f32 %v2580_v53, %v2579_v14  ;;  %v2582_v22 = vpop.f32.mrb[50].mxu1 }
 0x1c7   :  { %v1263_v23 = vadd.f32 %v2517_v15, %v3216_v3  ;;  %v2520_v55 = vadd.f32 %v2519_v18, %v2518_v16  ;;  %v2583_v11 = vpop.f32.mrb[51].mxu1 }
 0x1c8   :  { %v2584_v24 = vadd.f32 %v2583_v11, %v2582_v22 }
 0x1c9   :  { %v1266_v26 = vadd.f32 %v2520_v55, %v3218_v5  ;;  %v3258_v28 = vadd.f32 %v2581_v20, %v1263_v23 }
 0x1cb   :  { %v3260_v32 = vadd.f32 %v2584_v24, %v1266_v26  ;;  %v2521_v33 = vpop.f32.mrb[52].mxu0 }
 0x1cc   :  { %v2522_v34 = vpop.f32.mrb[53].mxu0  ;;  %v2585_v36 = vpop.f32.mrb[52].mxu1 }
 0x1cd   :  { %v2523_v38 = vadd.f32 %v2522_v34, %v2521_v33  ;;  %v2524_v3 = vpop.f32.mrb[54].mxu0  ;;  %v2586_v40 = vpop.f32.mrb[53].mxu1 }
 0x1ce   :  { %v2525_v43 = vpop.f32.mrb[55].mxu0  ;;  %v2587_v25 = vadd.f32 %v2586_v40, %v2585_v36  ;;  %v2588_v44 = vpop.f32.mrb[54].mxu1 }
 0x1cf   :  { %v1271_v5 = vadd.f32 %v2523_v38, %v3220_v19  ;;  %v2526_v45 = vadd.f32 %v2525_v43, %v2524_v3  ;;  %v2589_v46 = vpop.f32.mrb[55].mxu1 }
 0x1d0   :  { %v2590_v27 = vadd.f32 %v2589_v46, %v2588_v44 }
 0x1d1   :  { %v1274_v48 = vadd.f32 %v2526_v45, %v3222_v21  ;;  %v3264_v50 = vadd.f32 %v2587_v25, %v1271_v5 }
 0x1d3   :  { %v3266_v51 = vadd.f32 %v2590_v27, %v1274_v48  ;;  %v2527_v54 = vpop.f32.mrb[56].mxu0 }
 0x1d4   :  { %v2528_v57 = vpop.f32.mrb[57].mxu0  ;;  %v2591_v58 = vpop.f32.mrb[56].mxu1 }
 0x1d5   :  { %v2529_v59 = vadd.f32 %v2528_v57, %v2527_v54  ;;  %v2530_v60 = vpop.f32.mrb[58].mxu0  ;;  %v2592_v39 = vpop.f32.mrb[57].mxu1 }
 0x1d6   :  { %v2531_v61 = vpop.f32.mrb[59].mxu0  ;;  %v2593_v19 = vadd.f32 %v2592_v39, %v2591_v58  ;;  %v2594_v62 = vpop.f32.mrb[58].mxu1 }
 0x1d7   :  { %v1279_v63 = vadd.f32 %v2529_v59, %v3224_v35  ;;  %v2532_v41 = vadd.f32 %v2531_v61, %v2530_v60  ;;  %v2595_v0 = vpop.f32.mrb[59].mxu1 }
 0x1d8   :  { %v2596_v21 = vadd.f32 %v2595_v0, %v2594_v62 }
 0x1d9   :  { %v1282_v1 = vadd.f32 %v2532_v41, %v3226_v37  ;;  %v3270_v2 = vadd.f32 %v2593_v19, %v1279_v63 }
 0x1db   :  { %v3272_v6 = vadd.f32 %v2596_v21, %v1282_v1  ;;  %v2533_v8 = vpop.f32.mrb[60].mxu0 }
 0x1dc   :  { %v2534_v12 = vpop.f32.mrb[61].mxu0  ;;  %v2597_v14 = vpop.f32.mrb[60].mxu1 }
 0x1dd   :  { %v2535_v15 = vadd.f32 %v2534_v12, %v2533_v8  ;;  %v2536_v16 = vpop.f32.mrb[62].mxu0  ;;  %v2598_v53 = vpop.f32.mrb[61].mxu1 }
 0x1de   :  { %v2537_v17 = vpop.f32.mrb[63].mxu0  ;;  %v2599_v18 = vadd.f32 %v2598_v53, %v2597_v14  ;;  %v2600_v20 = vpop.f32.mrb[62].mxu1 }
 0x1df   :  { %v1287_v35 = vadd.f32 %v2535_v15, %v3228_v52  ;;  %v2538_v22 = vadd.f32 %v2537_v17, %v2536_v16  ;;  %v2601_v23 = vpop.f32.mrb[63].mxu1 }
 0x1e0   :  { %v2602_v55 = vadd.f32 %v2601_v23, %v2600_v20 }
 0x1e1   :  { %v1290_v37 = vadd.f32 %v2538_v22, %v3230_v56  ;;  %v3276_v11 = vadd.f32 %v2599_v18, %v1287_v35 }
 0x1e3   :  { %v3278_v24 = vadd.f32 %v2602_v55, %v1290_v37  ;;  %v2619_v26 = vpop.f32.mrb[64].mxu0 }
 0x1e4   :  { %v2620_v13 = vpop.f32.mrb[65].mxu0 }
 0x1e5   :  { %v2621_v31 = vadd.f32 %v2620_v13, %v2619_v26  ;;  %v2622_v33 = vpop.f32.mrb[66].mxu0 }
 0x1e6   :  { %v2623_v34 = vpop.f32.mrb[67].mxu0 }
 0x1e7   :  { %v3281_v36 = vadd.f32 %v2621_v31, %v3234_v9  ;;  %v2624_v38 = vadd.f32 %v2623_v34, %v2622_v33 }
 0x1e9   :  { %v3284_v52 = vadd.f32 %v2624_v38, %v3236_v10  ;;  %v1510_v9 = vmul.f32 %v3281_v36, %v3281_v36 }
 0x1eb   :  { %v2625_v3 = vpop.f32.mrb[68].mxu0  ;;  %v1511_v25 = vmul.f32 %v3284_v52, %v3284_v52  ;;  %v1489_v45 = vadd.f32 %v3284_v52, %v3281_v36 }
 0x1ec   :  { %v2626_v40 = vpop.f32.mrb[69].mxu0 }
 0x1ed   :  { %v2627_v42 = vadd.f32 %v2626_v40, %v2625_v3  ;;  %v2628_v56 = vpop.f32.mrb[70].mxu0  ;;  %v1526_v27 = vadd.f32 %v1511_v25, %v1510_v9 }
 0x1ee   :  { %v2629_v43 = vpop.f32.mrb[71].mxu0 }
 0x1ef   :  { %v3289_v44 = vadd.f32 %v2627_v42, %v3240_v29  ;;  %v2630_v5 = vadd.f32 %v2629_v43, %v2628_v56 }
 0x1f1   :  { %v1512_v10 = vmul.f32 %v3289_v44, %v3289_v44  ;;  %v3298_v46 = vadd.f32 %v2630_v5, %v3242_v30  ;;  %v1490_v48 = vadd.f32 %v1489_v45, %v3289_v44 }
 0x1f3   :  { %v2631_v54 = vpop.f32.mrb[72].mxu0  ;;  %v1527_v29 = vadd.f32 %v1526_v27, %v1512_v10  ;;  %v1513_v58 = vmul.f32 %v3298_v46, %v3298_v46  ;;  %v1491_v61 = vadd.f32 %v1490_v48, %v3298_v46 }
 0x1f4   :  { %v2632_v57 = vpop.f32.mrb[73].mxu0 }
 0x1f5   :  { %v2633_v59 = vadd.f32 %v2632_v57, %v2631_v54  ;;  %v2634_v60 = vpop.f32.mrb[74].mxu0  ;;  %v1528_v30 = vadd.f32 %v1527_v29, %v1513_v58 }
 0x1f6   :  { %v2635_v39 = vpop.f32.mrb[75].mxu0 }
 0x1f7   :  { %v3305_v19 = vadd.f32 %v2633_v59, %v3246_v47  ;;  %v2636_v62 = vadd.f32 %v2635_v39, %v2634_v60 }
 0x1f9   :  { %v1492_v63 = vadd.f32 %v1491_v61, %v3305_v19  ;;  %v1514_v41 = vmul.f32 %v3305_v19, %v3305_v19  ;;  %v3311_v0 = vadd.f32 %v2636_v62, %v3248_v49 }
 0x1fb   :  { %v1529_v21 = vadd.f32 %v1528_v30, %v1514_v41  ;;  %v1493_v1 = vadd.f32 %v1492_v63, %v3311_v0  ;;  %v1515_v8 = vmul.f32 %v3311_v0, %v3311_v0  ;;  %v2637_v12 = vpop.f32.mrb[76].mxu0 }
 0x1fc   :  { %v2638_v14 = vpop.f32.mrb[77].mxu0 }
 0x1fd   :  { %v1530_v47 = vadd.f32 %v1529_v21, %v1515_v8  ;;  %v2639_v15 = vadd.f32 %v2638_v14, %v2637_v12  ;;  %v2640_v16 = vpop.f32.mrb[78].mxu0 }
 0x1fe   :  { %v2641_v53 = vpop.f32.mrb[79].mxu0 }
 0x1ff   :  { %v3317_v17 = vadd.f32 %v2639_v15, %v3252_v4  ;;  %v2642_v18 = vadd.f32 %v2641_v53, %v2640_v16 }
 0x201   :  { %v1494_v20 = vadd.f32 %v1493_v1, %v3317_v17  ;;  %v1516_v49 = vmul.f32 %v3317_v17, %v3317_v17  ;;  %v3323_v35 = vadd.f32 %v2642_v18, %v3254_v7 }
 0x203   :  { %v1531_v22 = vadd.f32 %v1530_v47, %v1516_v49  ;;  %v1495_v23 = vadd.f32 %v1494_v20, %v3323_v35  ;;  %v1517_v55 = vmul.f32 %v3323_v35, %v3323_v35  ;;  %v2643_v37 = vpop.f32.mrb[80].mxu0 }
 0x204   :  { %v2644_v26 = vpop.f32.mrb[81].mxu0 }
 0x205   :  { %v1532_v13 = vadd.f32 %v1531_v22, %v1517_v55  ;;  %v2645_v4 = vadd.f32 %v2644_v26, %v2643_v37  ;;  %v2646_v31 = vpop.f32.mrb[82].mxu0 }
 0x206   :  { %v2647_v33 = vpop.f32.mrb[83].mxu0 }
 0x207   :  { %v3329_v34 = vadd.f32 %v2645_v4, %v3258_v28  ;;  %v2648_v38 = vadd.f32 %v2647_v33, %v2646_v31 }
 0x209   :  { %v1496_v3 = vadd.f32 %v1495_v23, %v3329_v34  ;;  %v1518_v7 = vmul.f32 %v3329_v34, %v3329_v34  ;;  %v3335_v40 = vadd.f32 %v2648_v38, %v3260_v32 }
 0x20b   :  { %v1533_v42 = vadd.f32 %v1532_v13, %v1518_v7  ;;  %v1497_v56 = vadd.f32 %v1496_v3, %v3335_v40  ;;  %v1519_v43 = vmul.f32 %v3335_v40, %v3335_v40  ;;  %v2649_v25 = vpop.f32.mrb[84].mxu0 }
 0x20c   :  { %v2650_v5 = vpop.f32.mrb[85].mxu0 }
 0x20d   :  { %v1534_v9 = vadd.f32 %v1533_v42, %v1519_v43  ;;  %v2651_v28 = vadd.f32 %v2650_v5, %v2649_v25  ;;  %v2652_v45 = vpop.f32.mrb[86].mxu0 }
 0x20e   :  { %v2653_v10 = vpop.f32.mrb[87].mxu0 }
 0x20f   :  { %v3341_v27 = vadd.f32 %v2651_v28, %v3264_v50  ;;  %v2654_v48 = vadd.f32 %v2653_v10, %v2652_v45 }
 0x211   :  { %v1498_v54 = vadd.f32 %v1497_v56, %v3341_v27  ;;  %v1520_v32 = vmul.f32 %v3341_v27, %v3341_v27  ;;  %v3347_v57 = vadd.f32 %v2654_v48, %v3266_v51  ;;  %v1556_v48 = vlaneseq }
 0x213   :  { %v1535_v29 = vadd.f32 %v1534_v9, %v1520_v32  ;;  %v1499_v58 = vadd.f32 %v1498_v54, %v3347_v57  ;;  %v1521_v59 = vmul.f32 %v3347_v57, %v3347_v57  ;;  %v2655_v60 = vpop.f32.mrb[88].mxu0  ;;  %v1557_v54 = vshrl.u32 %v1556_v48, 7  ;;  %v1487_v32 = vld [vmem:[%s3724_s2] sm:$0x1] }
 0x214   :  { %v2656_v39 = vpop.f32.mrb[89].mxu0 }
 0x215   :  { %v1536_v61 = vadd.f32 %v1535_v29, %v1521_v59  ;;  %v2657_v50 = vadd.f32 %v2656_v39, %v2655_v60  ;;  %v2658_v62 = vpop.f32.mrb[90].mxu0  ;;  %v3374_v29 = vsub.s32 0, %v1557_v54  ;;  %v3378_v60 = vld [vmem:[#allocation10 + $0x8] sm:$0xff]  ;;  %v3380_v39 = vld [vmem:[#allocation10 + $0x10] sm:$0xff] }
 0x216   :  { %v2659_v30 = vpop.f32.mrb[91].mxu0  ;;  %vm1615_vm1 = vcmp.ge.u32.totalorder %v3378_v60, 429496730  ;;  %vm1616_vm2 = vcmp.ge.u32.totalorder %v3380_v39, 429496730 }
 0x217   :  { %v3353_v63 = vadd.f32 %v2657_v50, %v3270_v2  ;;  %v2660_v41 = vadd.f32 %v2659_v30, %v2658_v62  ;;  %v3382_v50 = vld [vmem:[#allocation10 + $0x18] sm:$0xff]  ;;  %v3384_v62 = vld [vmem:[#allocation10 + $0x20] sm:$0xff]  ;;  %v3386_v30 = vld [vmem:[#allocation10 + $0x28] sm:$0xff] }
 0x218   :  { %vm1617_vm3 = vcmp.ge.u32.totalorder %v3382_v50, 429496730  ;;  %vm1618_vm4 = vcmp.ge.u32.totalorder %v3384_v62, 429496730  ;;  %vm1619_vm5 = vcmp.ge.u32.totalorder %v3386_v30, 429496730 }
 0x219   :  { %v1500_v21 = vadd.f32 %v1499_v58, %v3353_v63  ;;  %v1522_v51 = vmul.f32 %v3353_v63, %v3353_v63  ;;  %v3359_v1 = vadd.f32 %v2660_v41, %v3272_v6  ;;  %v3376_v58 = vld [vmem:[#allocation10] sm:$0xff] }
 0x21a   :  { %v1488_v41 = vld [vmem:[%s3725_s3] sm:$0x1]  ;;  %vm1614_vm0 = vcmp.ge.u32.totalorder %v3376_v58, 429496730 }
 0x21b   :  { %v1537_v8 = vadd.f32 %v1536_v61, %v1522_v51  ;;  %v1501_v12 = vadd.f32 %v1500_v21, %v3359_v1  ;;  %v1523_v14 = vmul.f32 %v3359_v1, %v3359_v1  ;;  %v2661_v47 = vpop.f32.mrb[92].mxu0  ;;  %v3392_v21 = vld [vmem:[#allocation10 + $0x30] sm:$0xff] }
 0x21c   :  { %v2662_v15 = vpop.f32.mrb[93].mxu0  ;;  %vm1620_vm6 = vcmp.ge.u32.totalorder %v3392_v21, 429496730 }
 0x21d   :  { %v1538_v16 = vadd.f32 %v1537_v8, %v1523_v14  ;;  %v2663_v2 = vadd.f32 %v2662_v15, %v2661_v47  ;;  %v2664_v53 = vpop.f32.mrb[94].mxu0 }
 0x21e   :  { %v2665_v18 = vpop.f32.mrb[95].mxu0 }
 0x21f   :  { %v3365_v20 = vadd.f32 %v2663_v2, %v3276_v11  ;;  %v2666_v49 = vadd.f32 %v2665_v18, %v2664_v53  ;;  %v3412_v2 = vld [vmem:[#allocation10 + $0x40] sm:$0xff] }
 0x220   :  { %vm1622_vm8 = vcmp.ge.u32.totalorder %v3412_v2, 429496730 }
 0x221   :  { %v1502_v22 = vadd.f32 %v1501_v12, %v3365_v20  ;;  %v1524_v6 = vmul.f32 %v3365_v20, %v3365_v20  ;;  %v1484_v23 = vadd.f32 %v2666_v49, %v3278_v24  ;;  %v3399_v12 = vld [vmem:[#allocation10 + $0x38] sm:$0xff] }
 0x222   :  { %vm1621_vm7 = vcmp.ge.u32.totalorder %v3399_v12, 429496730 }
 0x223   :  { %v1539_v55 = vadd.f32 %v1538_v16, %v1524_v6  ;;  %v1503_v37 = vadd.f32 %v1502_v22, %v1484_v23  ;;  %v1525_v26 = vmul.f32 %v1484_v23, %v1484_v23 }
 0x225   :  { %v1504_v13 = vrot.slane %v1503_v37, 4  ;;  %v1540_v4 = vadd.f32 %v1539_v55, %v1525_v26  ;;  %v3441_v55 = vld [vmem:[#allocation10 + $0x50] sm:$0xff]  ;;  %v3450_v26 = vld [vmem:[#allocation10 + $0x58] sm:$0xff] }
 0x226   :  { %vm1624_vm10 = vcmp.ge.u32.totalorder %v3441_v55, 429496730  ;;  %vm1625_vm11 = vcmp.ge.u32.totalorder %v3450_v26, 429496730 }
 0x227   :  { %v1505_v31 = vadd.f32 %v1504_v13, %v1503_v37  ;;  %v1541_v33 = vrot.slane %v1540_v4, 4 }
 0x229   :  { %v1506_v38 = vrot.slane %v1505_v31, 2  ;;  %v1542_v3 = vadd.f32 %v1541_v33, %v1540_v4  ;;  %v3456_v4 = vld [vmem:[#allocation10 + $0x60] sm:$0xff] }
 0x22a   :  { %vm1626_vm12 = vcmp.ge.u32.totalorder %v3456_v4, 429496730 }
 0x22b   :  { %v1507_v7 = vadd.f32 %v1506_v38, %v1505_v31  ;;  %v1543_v11 = vrot.slane %v1542_v3, 2  ;;  %v3458_v31 = vld [vmem:[#allocation10 + $0x68] sm:$0xff] }
 0x22c   :  { %vm1627_vm13 = vcmp.ge.u32.totalorder %v3458_v31, 429496730  ;;  %v2865_v31 = vld [vmem:[#allocation8 + $0x8] sm:$0xff]  }
 0x22d   :  { %v1508_v42 = vrot.slane %v1507_v7, 1  ;;  %v1544_v56 = vadd.f32 %v1543_v11, %v1542_v3 }
 0x22f   :  { %v1509_v43 = vadd.f32 %v1508_v42, %v1507_v7  ;;  %v1545_v25 = vrot.slane %v1544_v56, 1 }
 0x231   :  { %v1546_v5 = vadd.f32 %v1545_v25, %v1544_v56  ;;  %v1547_v9 = vmul.f32 0.0078125, %v1509_v43 }
 0x233   :  { %v1548_v28 = vmul.f32 0.0078125, %v1546_v5  ;;  %v1549_v45 = vmul.f32 %v1547_v9, %v1547_v9 }
 0x235   :  { %v1550_v24 = vsub.f32 %v1548_v28, %v1549_v45 }
 0x237   :  { %v1551_v10 = vadd.f32 1e-05, %v1550_v24 }
 0x239   :  { %2872 = vrsqrt.f32 %v1551_v10 }
 0x243   :  { %v2873_v59 = vpop.eup %2872 }
 0x244   :  { %v1553_v61 = vmul.f32 %v2873_v59, %v1487_v32 }
 0x246   :  { %v1554_v51 = vmul.f32 %v1553_v61, %v1547_v9  ;;  %v3395_v8 = vrot.slane %v1553_v61, %v3374_v29 }
 0x248   :  { %v1555_v14 = vsub.f32 %v1488_v41, %v1554_v51  ;;  %v3405_v47 = vmul.f32 %v3395_v8, %v1484_v23  ;;  %v1560_v15 = vmul.f32 %v3395_v8, %v3281_v36  ;;  %v1561_v16 = vmul.f32 %v3395_v8, %v3284_v52  ;;  %v3423_v36 = vld [vmem:[#allocation10 + $0x48] sm:$0xff] }
 0x249   :  { %v1562_v53 = vmul.f32 %v3395_v8, %v3289_v44  ;;  %v1563_v18 = vmul.f32 %v3395_v8, %v3298_v46  ;;  %v1564_v49 = vmul.f32 %v3395_v8, %v3305_v19  ;;  %v1565_v22 = vmul.f32 %v3395_v8, %v3311_v0 }
 0x24a   :  { %v3426_v52 = vrot.slane %v1555_v14, %v3374_v29  ;;  %v1566_v6 = vmul.f32 %v3395_v8, %v3317_v17  ;;  %v1567_v44 = vmul.f32 %v3395_v8, %v3323_v35  ;;  %v1568_v46 = vmul.f32 %v3395_v8, %v3329_v34 }
 0x24b   :  { %v1569_v19 = vmul.f32 %v3395_v8, %v3335_v40  ;;  %v1570_v0 = vmul.f32 %v3395_v8, %v3341_v27  ;;  %v1571_v23 = vmul.f32 %v3395_v8, %v3347_v57  ;;  %v1572_v17 = vmul.f32 %v3395_v8, %v3353_v63 }
 0x24c   :  { %v1582_v35 = vadd.f32 %v3426_v52, %v1560_v15  ;;  %v1583_v34 = vadd.f32 %v3426_v52, %v1561_v16  ;;  %v1584_v37 = vadd.f32 %v3426_v52, %v1562_v53  ;;  %v1585_v40 = vadd.f32 %v3426_v52, %v1563_v18 }
 0x24d   :  { %vm1623_vm9 = vcmp.ge.u32.totalorder %v3423_v36, 429496730  ;;  %v1586_v27 = vadd.f32 %v3426_v52, %v1564_v49  ;;  %v1587_v57 = vadd.f32 %v3426_v52, %v1565_v22  ;;  %v1588_v13 = vadd.f32 %v3426_v52, %v1566_v6  ;;  %v1613_v22 = vld [vmem:[#allocation10 + $0x78] sm:$0xff] }
 0x24e   :  { %v1589_v63 = vadd.f32 %v3426_v52, %v1567_v44  ;;  %v1630_v33 = vmul.f32 1.1111112, %v1582_v35  ;;  %v1631_v38 = vmul.f32 1.1111112, %v1583_v34  ;;  %v1632_v3 = vmul.f32 1.1111112, %v1584_v37 }
 0x24f   :  { %v1590_v7 = vadd.f32 %v3426_v52, %v1568_v46  ;;  %v1633_v11 = vmul.f32 1.1111112, %v1585_v40  ;;  %v1634_v42 = vmul.f32 1.1111112, %v1586_v27  ;;  %v1635_v56 = vmul.f32 1.1111112, %v1587_v57 }
 0x250   :  { %v1591_v43 = vadd.f32 %v3426_v52, %v1569_v19  ;;  %v1646_v25 = vsel %vm1614_vm0, %v1630_v33, 0.0  ;;  %v1647_v5 = vsel %vm1615_vm1, %v1631_v38, 0.0  ;;  %v1648_v9 = vsel %vm1616_vm2, %v1632_v3, 0.0  ;;  %v1612_v37 = vld [vmem:[#allocation10 + $0x70] sm:$0xff] }
 0x251   :  { %v1636_v28 = vmul.f32 1.1111112, %v1588_v13  ;;  %v1662_v45 = vmax.f32 %v1646_v25, 0.0  ;;  %v1663_v24 = vmax.f32 %v1647_v5, 0.0  ;;  %v1649_v10 = vsel %vm1617_vm3, %v1633_v11, 0.0  ;;  %v2867_v25 = vld [vmem:[#allocation8 + $0x18] sm:$0xff]  }
 0x252   :  { %v1664_v48 = vmax.f32 %v1648_v9, 0.0  ;;  %v1665_v54 = vmax.f32 %v1649_v10, 0.0  ;;  %v1650_v32 = vsel %vm1618_vm4, %v1634_v42, 0.0  ;;  %v1651_v58 = vsel %vm1619_vm5, %v1635_v56, 0.0  ;;  %v2868_v5 = vld [vmem:[#allocation8 + $0x20] sm:$0xff]   ;;  %v2869_v9 = vld [vmem:[#allocation8 + $0x28] sm:$0xff]  }
 0x253   :  { %v1637_v59 = vmul.f32 1.1111112, %v1589_v63  ;;  %v1678_v60 = vpack.c.bf16 %v1663_v24, %v1662_v45  ;;  %v1666_v39 = vmax.f32 %v1650_v32, 0.0  ;;  %v1667_v61 = vmax.f32 %v1651_v58, 0.0  ;;  %v2871_v45 = vld [vmem:[#allocation8 + $0x38] sm:$0xff]  }
 0x254   :  { %v1652_v41 = vsel %vm1620_vm6, %v1636_v28, 0.0  ;;  %v1679_v51 = vpack.c.bf16 %v1665_v54, %v1664_v48  ;;  %v1638_v15 = vmul.f32 1.1111112, %v1590_v7  ;;  %v1639_v53 = vmul.f32 1.1111112, %v1591_v43  ;;  %v2866_v43 = vld [vmem:[#allocation8 + $0x10] sm:$0xff]  }
 0x255   :  { %v1653_v50 = vsel %vm1621_vm7, %v1637_v59, 0.0  ;;  %v1668_v14 = vmax.f32 %v1652_v41, 0.0  ;;  %2715 = vmatprep.mubr.bf16.mxu1 %v1678_v60  ;;  %v1680_v16 = vpack.c.bf16 %v1667_v61, %v1666_v39  ;;  %v1592_v30 = vadd.f32 %v3426_v52, %v1570_v0  ;;  %v2870_v28 = vld [vmem:[#allocation8 + $0x30] sm:$0xff]  }
 0x256   :  { %v1669_v62 = vmax.f32 %v1653_v50, 0.0  ;;  %2716 = vmatmul.mubr.bf16.vlgmr.msra.gmra.mrb[64].mxu1 %v1679_v51  ;;  %v1654_v18 = vsel %vm1622_vm8, %v1638_v15, 0.0  ;;  %v1593_v49 = vadd.f32 %v3426_v52, %v1571_v23  ;;  %v1573_v21 = vmul.f32 %v3395_v8, %v3359_v1 }
 0x257   :  { %v1594_v12 = vadd.f32 %v3426_v52, %v1572_v17  ;;  %2719 = vmatprep.mubr.bf16.mxu1 %v1680_v16  ;;  %v1655_v44 = vsel %vm1623_vm9, %v1639_v53, 0.0  ;;  %v1670_v46 = vmax.f32 %v1654_v18, 0.0  ;;  %v1640_v19 = vmul.f32 1.1111112, %v1592_v30 }
 0x258   :  { %v1681_v6 = vpack.c.bf16 %v1669_v62, %v1668_v14  ;;  %v1671_v0 = vmax.f32 %v1655_v44, 0.0  ;;  %v1641_v35 = vmul.f32 1.1111112, %v1593_v49  ;;  %v1595_v2 = vadd.f32 %v3426_v52, %v1573_v21 }
 0x259   :  { %v1642_v34 = vmul.f32 1.1111112, %v1594_v12  ;;  %v1656_v23 = vsel %vm1624_vm10, %v1640_v19, 0.0  ;;  %v1574_v1 = vmul.f32 %v3395_v8, %v3365_v20  ;;  %v1597_v17 = vadd.f32 %v3426_v52, %v3405_v47 }
 0x25a   :  { %vm1629_vm14 = vcmp.ge.u32.totalorder %v1613_v22, 429496730  ;;  %v1682_v36 = vpack.c.bf16 %v1671_v0, %v1670_v46  ;;  %v1657_v40 = vsel %vm1625_vm11, %v1641_v35, 0.0  ;;  %v1672_v27 = vmax.f32 %v1656_v23, 0.0 }
 0x25b   :  { %v1643_v57 = vmul.f32 1.1111112, %v1595_v2  ;;  %v1673_v13 = vmax.f32 %v1657_v40, 0.0  ;;  %v1658_v63 = vsel %vm1626_vm12, %v1642_v34, 0.0  ;;  %v1596_v55 = vadd.f32 %v3426_v52, %v1574_v1  ;;  %v2864_v52 = vld [vmem:[#allocation8] sm:$0xff]  }
 0x25c   :  { %v1645_v33 = vmul.f32 1.1111112, %v1597_v17  ;;  %v1674_v8 = vmax.f32 %v1658_v63, 0.0  ;;  %vm1628_vm15 = vcmp.ge.u32.totalorder %v1612_v37, 429496730  ;;  %2731 = vmatprep.subr.bf16.mxu1 %v2864_v52 }
 0x25d   :  { %v1659_v20 = vsel %vm1627_vm13, %v1643_v57, 0.0  ;;  %v1683_v47 = vpack.c.bf16 %v1673_v13, %v1672_v27  ;;  %v1644_v3 = vmul.f32 1.1111112, %v1596_v55  ;;  %2732 = vmatpush3.bf16.msra.mxu1 %v2864_v52 }
 0x25e   :  { %v1675_v38 = vmax.f32 %v1659_v20, 0.0  ;;  %v1661_v7 = vsel %vm1629_vm14, %v1645_v33, 0.0  ;;  %2720 = vmatmul.mubr.bf16.gmra.mrb[68].mxu1 %v1681_v6  ;;  %2733 = vmatprep.subr.bf16.mxu1 %v2865_v31 }
 0x25f   :  { %v1677_v26 = vmax.f32 %v1661_v7, 0.0  ;;  %2723 = vmatprep.mubr.bf16.mxu1 %v1682_v36  ;;  %v1660_v42 = vsel %vm1628_vm15, %v1644_v3, 0.0 }
 0x260   :  { %v1684_v11 = vpack.c.bf16 %v1675_v38, %v1674_v8  ;;  %v1676_v56 = vmax.f32 %v1660_v42, 0.0 }
 0x261   :  { %2734 = vmatpush3.bf16.msra.mxu1 %v2865_v31 }
 0x262   :  { %v1685_v4 = vpack.c.bf16 %v1677_v26, %v1676_v56  ;;  %2735 = vmatprep.subr.bf16.mxu1 %v2866_v43 }
 0x265   :  { %2736 = vmatpush3.bf16.msra.mxu1 %v2866_v43 }
 0x266   :  { %2724 = vmatmul.mubr.bf16.gmra.mrb[72].mxu1 %v1683_v47  ;;  %2737 = vmatprep.subr.bf16.mxu1 %v2867_v25 }
 0x267   :  { %2727 = vmatprep.mubr.bf16.mxu1 %v1684_v11 }
 0x269   :  { %2738 = vmatpush3.bf16.msra.mxu1 %v2867_v25 }
 0x26a   :  { %2739 = vmatprep.subr.bf16.mxu1 %v2868_v5 }
 0x26d   :  { %2740 = vmatpush3.bf16.msra.mxu1 %v2868_v5 }
 0x26e   :  { %2728 = vmatmul.mubr.bf16.gmra.mrb[76].mxu1 %v1685_v4  ;;  %2741 = vmatprep.subr.bf16.mxu1 %v2869_v9 }
 0x271   :  { %2742 = vmatpush3.bf16.msra.mxu1 %v2869_v9 }
 0x272   :  { %2743 = vmatprep.subr.bf16.mxu1 %v2870_v28 }
 0x275   :  { %2744 = vmatpush3.bf16.msra.mxu1 %v2870_v28 }
 0x276   :  { %2745 = vmatprep.subr.bf16.mxu1 %v2871_v45 }
 0x279   :  { %2746 = vmatpush3.bf16.msra.mxu1 %v2871_v45 }
 0x329   :  { %v3505_v24 = vpop.f32.mrb[64].mxu1 }
 0x32a   :  { %v3507_v10 = vpop.f32.mrb[65].mxu1  ;;  %v1872_v60 = vmul.f32 %v3505_v24, %v3505_v24 }
 0x32b   :  { %v3509_v48 = vpop.f32.mrb[66].mxu1  ;;  %v1870_v32 = vmul.f32 %v3507_v10, %v3507_v10 }
 0x32c   :  { %v3511_v54 = vpop.f32.mrb[67].mxu1  ;;  %v1873_v41 = vmul.f32 %v3509_v48, %v3509_v48 }
 0x32d   :  { %v1849_v58 = vadd.f32 %v3511_v54, %v3507_v10  ;;  %v1871_v59 = vmul.f32 %v3511_v54, %v3511_v54 }
 0x32f   :  { %v1850_v39 = vadd.f32 %v3505_v24, %v1849_v58  ;;  %v1886_v61 = vadd.f32 %v1871_v59, %v1870_v32 }
 0x331   :  { %v1887_v51 = vadd.f32 %v1886_v61, %v1872_v60  ;;  %v3524_v50 = vpop.f32.mrb[68].mxu1  ;;  %v1851_v14 = vadd.f32 %v3509_v48, %v1850_v39 }
 0x332   :  { %v3527_v15 = vpop.f32.mrb[69].mxu1  ;;  %v1876_v22 = vmul.f32 %v3524_v50, %v3524_v50 }
 0x333   :  { %v1852_v16 = vadd.f32 %v1851_v14, %v3527_v15  ;;  %v1874_v62 = vmul.f32 %v3527_v15, %v3527_v15  ;;  %v1888_v53 = vadd.f32 %v1887_v51, %v1873_v41  ;;  %v3532_v30 = vpop.f32.mrb[70].mxu1 }
 0x334   :  { %v3534_v18 = vpop.f32.mrb[71].mxu1  ;;  %v1877_v46 = vmul.f32 %v3532_v30, %v3532_v30 }
 0x335   :  { %v1889_v49 = vadd.f32 %v1888_v53, %v1874_v62  ;;  %v1853_v21 = vadd.f32 %v1852_v16, %v3534_v18  ;;  %v1875_v12 = vmul.f32 %v3534_v18, %v3534_v18 }
 0x337   :  { %v1854_v6 = vadd.f32 %v3524_v50, %v1853_v21  ;;  %v1890_v44 = vadd.f32 %v1889_v49, %v1875_v12 }
 0x339   :  { %v1891_v19 = vadd.f32 %v1890_v44, %v1876_v22  ;;  %v3544_v0 = vpop.f32.mrb[72].mxu1  ;;  %v1855_v35 = vadd.f32 %v3532_v30, %v1854_v6  ;;  %v1847_v6 = vld [vmem:[%s3727_s5] sm:$0x1] }
 0x33a   :  { %v3547_v2 = vpop.f32.mrb[73].mxu1  ;;  %v1880_v57 = vmul.f32 %v3544_v0, %v3544_v0  ;;  %v3583_v44 = vld [vmem:[#allocation11] sm:$0xff] }
 0x33b   :  { %v1856_v34 = vadd.f32 %v1855_v35, %v3547_v2  ;;  %v1878_v23 = vmul.f32 %v3547_v2, %v3547_v2  ;;  %v1892_v1 = vadd.f32 %v1891_v19, %v1877_v46  ;;  %v3552_v17 = vpop.f32.mrb[74].mxu1  ;;  %v3585_v46 = vld [vmem:[#allocation11 + $0x8] sm:$0xff]  ;;  %v3587_v35 = vld [vmem:[#allocation11 + $0x10] sm:$0xff]  ;;  %vm1974_vm0 = vcmp.ge.u32.totalorder %v3583_v44, 429496730 }
 0x33c   :  { %v3554_v37 = vpop.f32.mrb[75].mxu1  ;;  %v1881_v55 = vmul.f32 %v3552_v17, %v3552_v17  ;;  %vm1975_vm1 = vcmp.ge.u32.totalorder %v3585_v46, 429496730  ;;  %vm1976_vm2 = vcmp.ge.u32.totalorder %v3587_v35, 429496730 }
 0x33d   :  { %v1893_v36 = vadd.f32 %v1892_v1, %v1878_v23  ;;  %v1857_v40 = vadd.f32 %v1856_v34, %v3554_v37  ;;  %v1879_v27 = vmul.f32 %v3554_v37, %v3554_v37  ;;  %v3589_v34 = vld [vmem:[#allocation11 + $0x18] sm:$0xff]  ;;  %v3591_v1 = vld [vmem:[#allocation11 + $0x20] sm:$0xff] }
 0x33e   :  { %vm1977_vm3 = vcmp.ge.u32.totalorder %v3589_v34, 429496730  ;;  %vm1978_vm4 = vcmp.ge.u32.totalorder %v3591_v1, 429496730 }
 0x33f   :  { %v1858_v13 = vadd.f32 %v3544_v0, %v1857_v40  ;;  %v1894_v63 = vadd.f32 %v1893_v36, %v1879_v27  ;;  %v3593_v36 = vld [vmem:[#allocation11 + $0x28] sm:$0xff]  ;;  %v1848_v40 = vld [vmem:[%s3728_s6] sm:$0x1] }
 0x340   :  { %vm1979_vm5 = vcmp.ge.u32.totalorder %v3593_v36, 429496730 }
 0x341   :  { %v1895_v33 = vadd.f32 %v1894_v63, %v1880_v57  ;;  %v3564_v20 = vpop.f32.mrb[76].mxu1  ;;  %v1859_v8 = vadd.f32 %v3552_v17, %v1858_v13  ;;  %v3605_v13 = vld [vmem:[#allocation11 + $0x30] sm:$0xff]  ;;  %v3609_v63 = vld [vmem:[#allocation11 + $0x38] sm:$0xff] }
 0x342   :  { %v3567_v47 = vpop.f32.mrb[77].mxu1  ;;  %v1884_v52 = vmul.f32 %v3564_v20, %v3564_v20  ;;  %vm1980_vm6 = vcmp.ge.u32.totalorder %v3605_v13, 429496730  ;;  %vm1981_vm7 = vcmp.ge.u32.totalorder %v3609_v63, 429496730 }
 0x343   :  { %v1860_v38 = vadd.f32 %v1859_v8, %v3567_v47  ;;  %v1882_v3 = vmul.f32 %v3567_v47, %v3567_v47  ;;  %v1896_v7 = vadd.f32 %v1895_v33, %v1881_v55  ;;  %v3572_v26 = vpop.f32.mrb[78].mxu1 }
 0x344   :  { %v1835_v11 = vpop.f32.mrb[79].mxu1  ;;  %v1885_v25 = vmul.f32 %v3572_v26, %v3572_v26 }
 0x345   :  { %v1897_v42 = vadd.f32 %v1896_v7, %v1882_v3  ;;  %v1861_v56 = vadd.f32 %v1860_v38, %v1835_v11  ;;  %v1883_v4 = vmul.f32 %v1835_v11, %v1835_v11  ;;  %v3616_v3 = vld [vmem:[#allocation11 + $0x40] sm:$0xff] }
 0x346   :  { %vm1982_vm8 = vcmp.ge.u32.totalorder %v3616_v3, 429496730 }
 0x347   :  { %v1862_v31 = vadd.f32 %v3564_v20, %v1861_v56  ;;  %v1898_v43 = vadd.f32 %v1897_v42, %v1883_v4 }
 0x349   :  { %v1863_v5 = vadd.f32 %v3572_v26, %v1862_v31  ;;  %v1899_v9 = vadd.f32 %v1898_v43, %v1884_v52  ;;  %v3648_v52 = vld [vmem:[#allocation11 + $0x50] sm:$0xff] }
 0x34a   :  { %vm1984_vm11 = vcmp.ge.u32.totalorder %v3648_v52, 429496730 }
 0x34b   :  { %v1864_v28 = vrot.slane %v1863_v5, 4  ;;  %v1900_v45 = vadd.f32 %v1899_v9, %v1885_v25  ;;  %v3656_v25 = vld [vmem:[#allocation11 + $0x58] sm:$0xff] }
 0x34c   :  { %vm1985_vm12 = vcmp.ge.u32.totalorder %v3656_v25, 429496730 }
 0x34d   :  { %v1865_v32 = vadd.f32 %v1864_v28, %v1863_v5  ;;  %v1901_v58 = vrot.slane %v1900_v45, 4 }
 0x34f   :  { %v1866_v59 = vrot.slane %v1865_v32, 2  ;;  %v1902_v60 = vadd.f32 %v1901_v58, %v1900_v45 }
 0x351   :  { %v1867_v39 = vadd.f32 %v1866_v59, %v1865_v32  ;;  %v1903_v61 = vrot.slane %v1902_v60, 2 }
 0x353   :  { %v1868_v41 = vrot.slane %v1867_v39, 1  ;;  %v1904_v51 = vadd.f32 %v1903_v61, %v1902_v60 }
 0x355   :  { %v1869_v14 = vadd.f32 %v1868_v41, %v1867_v39  ;;  %v1905_v16 = vrot.slane %v1904_v51, 1 }
 0x357   :  { %v1906_v62 = vadd.f32 %v1905_v16, %v1904_v51  ;;  %v1907_v53 = vmul.f32 0.0078125, %v1869_v14 }
 0x359   :  { %v1908_v49 = vmul.f32 0.0078125, %v1906_v62  ;;  %v1909_v21 = vmul.f32 %v1907_v53, %v1907_v53 }
 0x35b   :  { %v1910_v12 = vsub.f32 %v1908_v49, %v1909_v21 }
 0x35d   :  { %v1911_v22 = vadd.f32 1e-05, %v1910_v12 }
 0x35f   :  { %2874 = vrsqrt.f32 %v1911_v22 }
 0x369   :  { %v2875_v19 = vpop.eup %2874 }
 0x36a   :  { %v1913_v23 = vmul.f32 %v2875_v19, %v1847_v6 }
 0x36c   :  { %v1914_v27 = vmul.f32 %v1913_v23, %v1907_v53  ;;  %v3601_v57 = vrot.slane %v1913_v23, %v3374_v29 }
 0x36e   :  { %v1915_v55 = vsub.f32 %v1848_v40, %v1914_v27  ;;  %v1933_v33 = vmul.f32 %v3601_v57, %v1835_v11  ;;  %v1920_v8 = vmul.f32 %v3601_v57, %v3507_v10  ;;  %v1921_v38 = vmul.f32 %v3601_v57, %v3511_v54  ;;  %v3627_v10 = vld [vmem:[#allocation11 + $0x68] sm:$0xff] }
 0x36f   :  { %v1922_v7 = vmul.f32 %v3505_v24, %v3601_v57  ;;  %v1923_v42 = vmul.f32 %v3509_v48, %v3601_v57  ;;  %v1924_v56 = vmul.f32 %v3601_v57, %v3527_v15  ;;  %v1925_v11 = vmul.f32 %v3601_v57, %v3534_v18  ;;  %v3639_v15 = vld [vmem:[#allocation11 + $0x48] sm:$0xff] }
 0x370   :  { %v3630_v54 = vrot.slane %v1915_v55, %v3374_v29  ;;  %v1926_v4 = vmul.f32 %v3524_v50, %v3601_v57  ;;  %v1927_v24 = vmul.f32 %v3532_v30, %v3601_v57  ;;  %v1928_v48 = vmul.f32 %v3601_v57, %v3547_v2 }
 0x371   :  { %v1929_v18 = vmul.f32 %v3601_v57, %v3554_v37  ;;  %v1930_v29 = vmul.f32 %v3544_v0, %v3601_v57  ;;  %v1931_v50 = vmul.f32 %v3552_v17, %v3601_v57  ;;  %v1932_v30 = vmul.f32 %v3601_v57, %v3567_v47 }
 0x372   :  { %v1955_v2 = vadd.f32 %v3630_v54, %v1933_v33  ;;  %v1942_v31 = vadd.f32 %v3630_v54, %v1920_v8  ;;  %v1943_v43 = vadd.f32 %v3630_v54, %v1921_v38  ;;  %v1944_v37 = vadd.f32 %v3630_v54, %v1922_v7  ;;  %v1970_v8 = vld [vmem:[#allocation11 + $0x60] sm:$0xff] }
 0x373   :  { %vm1987_vm9 = vcmp.ge.u32.totalorder %v3627_v10, 429496730  ;;  %v1945_v0 = vadd.f32 %v3630_v54, %v1923_v42  ;;  %v1946_v17 = vadd.f32 %v3630_v54, %v1924_v56  ;;  %v1947_v5 = vadd.f32 %v3630_v54, %v1925_v11 }
 0x374   :  { %v1948_v47 = vadd.f32 %v3630_v54, %v1926_v4  ;;  %vm1983_vm10 = vcmp.ge.u32.totalorder %v3639_v15, 429496730  ;;  %v2003_v9 = vmul.f32 1.1111112, %v1955_v2  ;;  %v1990_v28 = vmul.f32 1.1111112, %v1942_v31 }
 0x375   :  { %v1991_v45 = vmul.f32 1.1111112, %v1943_v43  ;;  %v1949_v32 = vadd.f32 %v3630_v54, %v1927_v24  ;;  %v1992_v58 = vmul.f32 1.1111112, %v1944_v37  ;;  %v1993_v59 = vmul.f32 1.1111112, %v1945_v0 }
 0x376   :  { %v1994_v60 = vmul.f32 1.1111112, %v1946_v17  ;;  %v1950_v39 = vadd.f32 %v3630_v54, %v1928_v48  ;;  %v2006_v61 = vsel %vm1974_vm0, %v1990_v28, 0.0  ;;  %v1995_v51 = vmul.f32 1.1111112, %v1947_v5  ;;  %v1972_v31 = vld [vmem:[#allocation11 + $0x70] sm:$0xff] }
 0x377   :  { %v2007_v41 = vsel %vm1975_vm1, %v1991_v45, 0.0  ;;  %v1996_v14 = vmul.f32 1.1111112, %v1948_v47  ;;  %v2022_v16 = vmax.f32 %v2006_v61, 0.0  ;;  %v2008_v53 = vsel %vm1976_vm2, %v1992_v58, 0.0  ;;  %v1973_v37 = vld [vmem:[#allocation11 + $0x78] sm:$0xff] }
 0x378   :  { %v2023_v62 = vmax.f32 %v2007_v41, 0.0  ;;  %v2009_v49 = vsel %vm1977_vm3, %v1993_v59, 0.0  ;;  %v2024_v21 = vmax.f32 %v2008_v53, 0.0  ;;  %v2010_v22 = vsel %vm1978_vm4, %v1994_v60, 0.0 }
 0x379   :  { %v2025_v12 = vmax.f32 %v2009_v49, 0.0  ;;  %v2011_v6 = vsel %vm1979_vm5, %v1995_v51, 0.0  ;;  %v2026_v46 = vmax.f32 %v2010_v22, 0.0  ;;  %v1997_v23 = vmul.f32 1.1111112, %v1949_v32 }
 0x37a   :  { %v2038_v44 = vpack.c.bf16 %v2023_v62, %v2022_v16  ;;  %v2027_v19 = vmax.f32 %v2011_v6, 0.0  ;;  %v2012_v35 = vsel %vm1980_vm6, %v1996_v14, 0.0  ;;  %v1951_v27 = vadd.f32 %v3630_v54, %v1929_v18 }
 0x37b   :  { %v2039_v40 = vpack.c.bf16 %v2025_v12, %v2024_v21  ;;  %v1998_v34 = vmul.f32 1.1111112, %v1950_v39  ;;  %v2013_v1 = vsel %vm1981_vm7, %v1997_v23, 0.0  ;;  %v2028_v33 = vmax.f32 %v2012_v35, 0.0 }
 0x37c   :  { %2747 = vmatprep.mubr.bf16.mxu1 %v2038_v44  ;;  %v2040_v55 = vpack.c.bf16 %v2027_v19, %v2026_v46  ;;  %v1952_v36 = vadd.f32 %v3630_v54, %v1930_v29  ;;  %v2029_v38 = vmax.f32 %v2013_v1, 0.0  ;;  %v1999_v7 = vmul.f32 1.1111112, %v1951_v27 }
 0x37d   :  { %2748 = vmatmul.mubr.bf16.vlgmr.msra.gmra.mrb[80].mxu1 %v2039_v40  ;;  %v2014_v42 = vsel %vm1982_vm8, %v1998_v34, 0.0  ;;  %v1953_v13 = vadd.f32 %v3630_v54, %v1931_v50  ;;  %v1954_v4 = vadd.f32 %v3630_v54, %v1932_v30  ;;  %v2019_v63 = vsel %vm1987_vm9, %v2003_v9, 0.0 }
 0x37e   :  { %2751 = vmatprep.mubr.bf16.mxu1 %v2040_v55  ;;  %v2030_v56 = vmax.f32 %v2014_v42, 0.0  ;;  %v2000_v11 = vmul.f32 1.1111112, %v1952_v36  ;;  %v2041_v24 = vpack.c.bf16 %v2029_v38, %v2028_v33  ;;  %v2015_v48 = vsel %vm1983_vm10, %v1999_v7, 0.0 }
 0x37f   :  { %v2001_v18 = vmul.f32 1.1111112, %v1953_v13  ;;  %vm1986_vm13 = vcmp.ge.u32.totalorder %v1970_v8, 429496730  ;;  %v2031_v29 = vmax.f32 %v2015_v48, 0.0  ;;  %v1934_v50 = vmul.f32 %v3564_v20, %v3601_v57 }
 0x380   :  { %v2016_v3 = vsel %vm1984_vm11, %v2000_v11, 0.0  ;;  %v2002_v2 = vmul.f32 1.1111112, %v1954_v4  ;;  %v2035_v43 = vmax.f32 %v2019_v63, 0.0  ;;  %v1935_v15 = vmul.f32 %v3572_v26, %v3601_v57 }
 0x381   :  { %v2017_v30 = vsel %vm1985_vm12, %v2001_v18, 0.0  ;;  %v2032_v10 = vmax.f32 %v2016_v3, 0.0  ;;  %v2042_v0 = vpack.c.bf16 %v2031_v29, %v2030_v56  ;;  %v1956_v52 = vadd.f32 %v3630_v54, %v1934_v50 }
 0x382   :  { %v2033_v17 = vmax.f32 %v2017_v30, 0.0  ;;  %v2018_v5 = vsel %vm1986_vm13, %v2002_v2, 0.0  ;;  %v1957_v9 = vadd.f32 %v3630_v54, %v1935_v15  ;;  %vm1988_vm14 = vcmp.ge.u32.totalorder %v1972_v31, 429496730  ;;  %v2338_v54 = vld [vmem:[%s3730_s8] ss:$0 sm:$0xff] }
 0x383   :  { %v2034_v47 = vmax.f32 %v2018_v5, 0.0  ;;  %vm1989_vm15 = vcmp.ge.u32.totalorder %v1973_v37, 429496730  ;;  %v2004_v28 = vmul.f32 1.1111112, %v1956_v52  ;;  %s3052_s8 = smov [#allocation13]  }
 0x384   :  { %v2043_v20 = vpack.c.bf16 %v2033_v17, %v2032_v10  ;;  %v2005_v45 = vmul.f32 1.1111112, %v1957_v9  ;;  %s2235_s20 = sshll.u32 %s3052_s8, 4  ;;  %s2236_s20 = int_to_ptr.vmem [resolvable:$true] %s2235_s20 }
 0x385   :  { %2752 = vmatmul.mubr.bf16.gmra.mrb[84].mxu1 %v2041_v24  ;;  %v2044_v25 = vpack.c.bf16 %v2035_v43, %v2034_v47  ;;  %v2020_v32 = vsel %vm1988_vm14, %v2004_v28, 0.0  ;;  %s3008_s21 = scalar_lea.vmem %s2236_s20, 2048  ;;  %p3013_p7 = scmp.lt.s32.totalorder %s2236_s20, %s2236_s20 }
 0x386   :  { %2755 = vmatprep.mubr.bf16.mxu1 %v2042_v0  ;;  %v2021_v58 = vsel %vm1989_vm15, %v2005_v45, 0.0  ;;  %v2036_v26 = vmax.f32 %v2020_v32, 0.0  ;;  %p3009_p6 = scmp.ne.s32.totalorder %s2236_s20, %s3008_s21  ;;  %p3014_p8 = scmp.lt.s32.totalorder %s3008_s21, %s3008_s21 }
 0x387   :  { %v2037_v57 = vmax.f32 %v2021_v58, 0.0 }
 0x388   :  { %p3015_p9 = por %p3014_p8, %p3013_p7 }
 0x389   :  { %v2045_v59 = vpack.c.bf16 %v2037_v57, %v2036_v26 }
 0x38a   :  { %p3016_p10 = pnand %p3015_p9, %p3009_p6 }
 0x38d   :  { %2756 = vmatmul.mubr.bf16.gmra.mrb[88].mxu1 %v2043_v20 }
 0x38e   :  { %2759 = vmatprep.mubr.bf16.mxu1 %v2044_v25 }
 0x395   :  { %2760 = vmatmul.mubr.bf16.gmra.mrb[92].mxu1 %v2045_v59 }
 0x450   :  { %v2749_v60 = vpop.f32.mrb[80].mxu1 }
 0x451   :  { %v2160_v39 = vadd.f32 %v2749_v60, %v2338_v54  ;;  %v2151_v61 = vpop.f32.mrb[81].mxu1 }
 0x452   :  { %v2152_v41 = vadd.f32 %v2338_v54, %v2151_v61  ;;  %v2750_v51 = vpop.f32.mrb[82].mxu1 }
 0x453   :  { %2216 = vst [vmem:[#allocation13 + $0x10] sm:$0xff] %v2160_v39  ;;  %v2163_v14 = vadd.f32 %v2750_v51, %v2338_v54  ;;  %v2154_v16 = vpop.f32.mrb[83].mxu1 }
 0x454   :  { %2214 = vst [vmem:[#allocation13] sm:$0xff] %v2152_v41  ;;  %v2155_v62 = vadd.f32 %v2338_v54, %v2154_v16 }
 0x455   :  { %2217 = vst [vmem:[#allocation13 + $0x18] sm:$0xff] %v2163_v14 }
 0x456   :  { %2215 = vst [vmem:[#allocation13 + $0x8] sm:$0xff] %v2155_v62 }
 0x458   :  { %v2753_v53 = vpop.f32.mrb[84].mxu1 }
 0x459   :  { %v2176_v49 = vadd.f32 %v2753_v53, %v2338_v54  ;;  %v2167_v21 = vpop.f32.mrb[85].mxu1 }
 0x45a   :  { %v2168_v12 = vadd.f32 %v2338_v54, %v2167_v21  ;;  %v2754_v22 = vpop.f32.mrb[86].mxu1 }
 0x45b   :  { %2220 = vst [vmem:[#allocation13 + $0x30] sm:$0xff] %v2176_v49  ;;  %v2179_v6 = vadd.f32 %v2754_v22, %v2338_v54  ;;  %v2170_v44 = vpop.f32.mrb[87].mxu1 }
 0x45c   :  { %2218 = vst [vmem:[#allocation13 + $0x20] sm:$0xff] %v2168_v12  ;;  %v2171_v46 = vadd.f32 %v2338_v54, %v2170_v44 }
 0x45d   :  { %2221 = vst [vmem:[#allocation13 + $0x38] sm:$0xff] %v2179_v6 }
 0x45e   :  { %2219 = vst [vmem:[#allocation13 + $0x28] sm:$0xff] %v2171_v46 }
 0x460   :  { %v2757_v19 = vpop.f32.mrb[88].mxu1 }
 0x461   :  { %v2192_v23 = vadd.f32 %v2757_v19, %v2338_v54  ;;  %v2183_v40 = vpop.f32.mrb[89].mxu1 }
 0x462   :  { %v2184_v35 = vadd.f32 %v2338_v54, %v2183_v40  ;;  %v2758_v27 = vpop.f32.mrb[90].mxu1 }
 0x463   :  { %2224 = vst [vmem:[#allocation13 + $0x50] sm:$0xff] %v2192_v23  ;;  %v2195_v34 = vadd.f32 %v2758_v27, %v2338_v54  ;;  %v2186_v55 = vpop.f32.mrb[91].mxu1 }
 0x464   :  { %2222 = vst [vmem:[#allocation13 + $0x40] sm:$0xff] %v2184_v35  ;;  %v2187_v1 = vadd.f32 %v2338_v54, %v2186_v55 }
 0x465   :  { %2225 = vst [vmem:[#allocation13 + $0x58] sm:$0xff] %v2195_v34 }
 0x466   :  { %2223 = vst [vmem:[#allocation13 + $0x48] sm:$0xff] %v2187_v1 }
 0x468   :  { %v2761_v33 = vpop.f32.mrb[92].mxu1 }
 0x469   :  { %v2208_v36 = vadd.f32 %v2761_v33, %v2338_v54  ;;  %v2199_v8 = vpop.f32.mrb[93].mxu1 }
 0x46a   :  { %v2200_v38 = vadd.f32 %v2338_v54, %v2199_v8  ;;  %v2762_v7 = vpop.f32.mrb[94].mxu1 }
 0x46b   :  { %2228 = vst [vmem:[#allocation13 + $0x70] sm:$0xff] %v2208_v36  ;;  %v2211_v42 = vadd.f32 %v2762_v7, %v2338_v54  ;;  %v2202_v13 = vpop.f32.mrb[95].mxu1 }
 0x46c   :  { %2226 = vst [vmem:[#allocation13 + $0x60] sm:$0xff] %v2200_v38  ;;  %v2203_v56 = vadd.f32 %v2338_v54, %v2202_v13 }
 0x46d   :  { %2229 = vst [vmem:[#allocation13 + $0x78] sm:$0xff] %v2211_v42 }
 0x46e   :  { %2227 = vst [vmem:[#allocation13 + $0x68] sm:$0xff] %v2203_v56 }
 0x46f   :  { %3019 = shalt.err (!%p3016_p10)
}
 0x470   :  { %s3020_s22 = scalar_lea.hbm %s3733_s11, 2048 }
 0x471   :  { %p3021_p11 = scmp.ne.s32.totalorder %s3733_s11, %s3020_s22  ;;  %p3024_p12 = scmp.lt.u32.totalorder %s3020_s22, %s3733_s11 }
 0x473   :  { %p3026_p13 = pnand %p3024_p12, %p3021_p11 }
 0x475   :  { %3029 = shalt.err (!%p3026_p13)
}
 0x476   :  { %2241 = dma.vmem_to_hbm [thread:$0]  %s2236_s20, 2048, %s3733_s11, [#allocation4], %s3049_s4, %s3049_s4, %s3050_s27  }
 0x477   :  { %3038 = dma.done.wait [#allocation4], 2048  }
 0x478   :  { %3039 = vsyncadd [#allocation4], 4294965248 }
 0x479   :  { %2245 = vsyncpa [#allocation3], 1 }
 0x47a   :  { %2246 = vsyncpa [#allocation6], 1 }
 0x47b   :  { %2247 = vsyncpa [#allocation9], 1 }
 0x47c   :  { %2248 = vsyncpa [#allocation12], 1 }
 0x47d   :  { %2249 = vsyncpa [#allocation4], 1 }

</bundles_post_ra>
